<compile_context>
chip_gen: v6e
topology: v6e:2x2x1
jax: 0.10.0
libtpu: 0.0.40
codegen_flags: <defaults>
</compile_context>

<pallas_src>
import functools

import jax
import jax.numpy as jnp
from jax import lax
from jax.experimental import pallas as pl
from jax.experimental.pallas import tpu as pltpu


def _upconv_kernel(xm_ref, xh_ref, w_ref, b_ref, o_ref, *, rt, W, C):
    """One (batch, row-block) step of ConvTranspose2d(k=4, s=2, p=1).

    xm_ref: (rt, W+2, C)  bf16  main rows of the zero-padded NHWC input
    xh_ref: (2,  W+2, C)  bf16  2-row halo directly below the main rows
    w_ref : (8, 2C, C)    bf16  packed weights, block = r*4 + s*2 + da, rows = db*C + ci
    b_ref : (1, C)        f32   bias
    o_ref : (rt, W, 4C)   bf16  parity-packed output, channel block p = 2r + s

    Pixel-shuffle decomposition:
      out[2*ih+r, 2*jw+s, co] = bias[co]
        + sum_{da,db in {0,1}} win[ih+r+da, jw+s+db, :] @ weight[:, co, 3-r-2da, 3-s-2db]
    The two column taps (db) are packed along the contraction axis (K = 2C); the two
    row taps (da) are two MXU dots accumulated in f32.  Exactly 16*C^2 MACs/pixel.
    """
    win = jnp.concatenate([xm_ref[...], xh_ref[...]], axis=0)       # (rt+2, W+2, C) bf16
    bias = b_ref[...]                                               # (1, C) f32

    for s in range(2):                    # output column parity
        # K-pack the two column taps along the channel axis: (rt+2, W, 2C) bf16.
        colcat = jnp.concatenate(
            [win[:, s:s + W, :], win[:, s + 1:s + 1 + W, :]], axis=-1)
        for r in range(2):                # output row parity
            idx = r * 4 + s * 2
            lhs0 = colcat[r:r + rt].reshape(rt * W, 2 * C)          # row tap da = 0
            lhs1 = colcat[r + 1:r + 1 + rt].reshape(rt * W, 2 * C)  # row tap da = 1
            y = jnp.dot(lhs0, w_ref[idx], preferred_element_type=jnp.float32)
            y = y + jnp.dot(lhs1, w_ref[idx + 1], preferred_element_type=jnp.float32)
            y = y + bias
            p = 2 * r + s
            o_ref[:, :, p * C:(p + 1) * C] = y.reshape(rt, W, C).astype(o_ref.dtype)


def _vmem_limit_bytes():
    """Generation-aware scoped-VMEM limit (leave headroom for Mosaic scratch)."""
    cap = None
    try:
        cap = getattr(pltpu.get_tpu_info(), "vmem_capacity_bytes", None)
    except Exception:
        cap = None
    if cap is None:
        cap = 64 * 1024 * 1024            # conservative default (v7x-sized)
    if cap <= 64 * 1024 * 1024:           # 64 MiB physical per TensorCore (v7x-class)
        return 44 * 1024 * 1024
    return 96 * 1024 * 1024               # v5e / v6e: 128 MiB physical


def _pick_block_rows(N, H, W, C, budget_bytes):
    """Largest even row-block that fits the VMEM budget and keeps the grid busy."""
    Wp = W + 2
    # Grid-invariant VMEM: packed weights (8,2C,C) bf16 + bias + the 2-row halo,
    # all double-buffered by the BlockSpec pipeline.
    fixed = 2 * (8 * 2 * C * C * 2) + 2 * (2 * Wp * C * 2) + 2 * (C * 4) + (64 << 10)
    # Per-input-row VMEM: main input block (bf16, x2 buffers), bf16 output block
    # (x2 buffers) and in-kernel temporaries (bf16 window / col-cat + f32 dot results).
    per_row = 2 * (Wp * C * 2) + 2 * (W * 4 * C * 2) + W * C * 26
    avail = max(budget_bytes - fixed, 2 * per_row)
    rt = int(avail // per_row)
    # Keep >= ~4 grid steps so both v7x TensorCores (fully parallel grid) get work
    # and the pipeline has something to overlap.
    rt = min(rt, max(2, (N * H + 3) // 4))
    rt = min(rt, H + (H % 2))
    rt = max(2, rt - (rt % 2))
    # Prefer an even divisor of H (avoids padded remainder rows); else the wrapper pads.
    for cand in range(rt, 1, -2):
        if H % cand == 0:
            return cand
    return rt


def upsample_conv(x_nchw, weight, bias, *, block_rows=None):
    """ConvTranspose2d(dim, dim, kernel_size=4, stride=2, padding=1).

    x_nchw: (N, C, H, W); weight: (C_in, C_out, 4, 4) (PyTorch ConvTranspose2d layout);
    bias: (C_out,).  Returns (N, C, 2H, 2W) in x_nchw.dtype.
    """
    N, C, H, W = x_nchw.shape
    vmem_limit = _vmem_limit_bytes()
    if block_rows is None:
        rt = _pick_block_rows(N, H, W, C, int(vmem_limit * 0.6))
    else:
        rt = max(2, block_rows - (block_rows % 2))
    # The halo BlockSpec addresses padded row (i+1)*rt via a height-2 block, so rt
    # must stay even for the halo index_map to be exact.
    assert rt % 2 == 0 and rt >= 2, f"block_rows must be even and >= 2, got {rt}"

    Hp = -(-H // rt) * rt                 # H rounded up to a multiple of rt
    Wp = W + 2

    # NCHW -> NHWC, cast to bf16, zero-pad 1 row/col each side (+ zero rows at the
    # bottom up to Hp; their outputs are sliced off after the kernel).
    x = jnp.transpose(x_nchw, (0, 2, 3, 1)).astype(jnp.bfloat16)
    xp = jnp.pad(x, ((0, 0), (1, 1 + Hp - H), (1, 1), (0, 0)))      # (N, Hp+2, Wp, C)

    # Pack the 4x4 transposed-conv kernel into 8 (2C, C) blocks:
    #   block index = r*4 + s*2 + da,  rows = db*C + ci,  cols = co
    #   kernel tap  = (kh, kw) = (3 - r - 2*da, 3 - s - 2*db)
    # Exactly 16*C^2 weights — no structural zeros.
    wf = weight.astype(jnp.float32)
    blocks = []
    for r in (0, 1):
        for s in (0, 1):
            for da in (0, 1):
                kh = 3 - r - 2 * da
                blocks.append(jnp.concatenate(
                    [wf[:, :, kh, 3 - s - 2 * db] for db in (0, 1)], axis=0))
    w_pack = jnp.stack(blocks, axis=0).astype(jnp.bfloat16)         # (8, 2C, C)
    b_pack = bias.astype(jnp.float32).reshape(1, C)

    grid = (N, Hp // rt)
    out = pl.pallas_call(
        functools.partial(_upconv_kernel, rt=rt, W=W, C=C),
        out_shape=jax.ShapeDtypeStruct((N, Hp, W, 4 * C), jnp.bfloat16),
        grid_spec=pltpu.PrefetchScalarGridSpec(
            num_scalar_prefetch=0,
            grid=grid,
            in_specs=[
                # main rt rows of the padded input: padded rows [i*rt, i*rt + rt)
                pl.BlockSpec((None, rt, Wp, C), lambda n, i: (n, i, 0, 0)),
                # 2-row halo just below: padded rows [(i+1)*rt, (i+1)*rt + 2)
                pl.BlockSpec((None, 2, Wp, C),
                             lambda n, i: (n, (i + 1) * (rt // 2), 0, 0)),
                # grid-invariant operands: constant index_map => DMA'd once, reused
                pl.BlockSpec((8, 2 * C, C), lambda n, i: (0, 0, 0)),
                pl.BlockSpec((1, C), lambda n, i: (0, 0)),
            ],
            out_specs=pl.BlockSpec((None, rt, W, 4 * C), lambda n, i: (n, i, 0, 0)),
        ),
        compiler_params=pltpu.CompilerParams(
            dimension_semantics=("parallel", "parallel"),
            vmem_limit_bytes=vmem_limit),
    )(xp, xp, w_pack, b_pack)

    # bf16 epilogue: (N, Hp, W, 2, 2, C) -> NCHW with y = 2*ih + r, x = 2*jw + s.
    # Single transpose pass over the bf16 output; f32 only at the final materialize.
    out = out.reshape(N, Hp, W, 2, 2, C)
    out = jnp.transpose(out, (0, 5, 1, 3, 2, 4))[:, :, :H]           # (N, C, H, 2, W, 2)
    return out.reshape(N, C, 2 * H, 2 * W).astype(x_nchw.dtype)


def conv_transpose_ref(x, weight, bias, dtype=jnp.float32):
    """Pure-JAX reference: ConvTranspose2d(k=4, s=2, p=1) via dilated conv."""
    w_rot = jnp.transpose(weight[:, :, ::-1, ::-1], (1, 0, 2, 3)).astype(dtype)
    y = lax.conv_general_dilated(
        x.astype(dtype), w_rot, window_strides=(1, 1), padding=((2, 2), (2, 2)),
        lhs_dilation=(2, 2), dimension_numbers=("NCHW", "OIHW", "NCHW"),
        preferred_element_type=jnp.float32)
    return y + bias[None, :, None, None].astype(jnp.float32)


if __name__ == "__main__":
    key = jax.random.PRNGKey(0)
    k1, k2, k3 = jax.random.split(key, 3)
    N, C, H, W = 2, 4, 16, 16
    x = jax.random.normal(k1, (N, C, H, W), dtype=jnp.float32)
    # deterministic synthetic params (shapes match nn.ConvTranspose2d(dim, dim, 4, 2, 1))
    weight = jax.random.normal(k2, (C, C, 4, 4), dtype=jnp.float32) / jnp.sqrt(C * 16.0)
    bias = jax.random.normal(k3, (C,), dtype=jnp.float32) * 0.01

    y = jax.block_until_ready(upsample_conv(x, weight, bias))
    assert y.shape == (N, C, 2 * H, 2 * W)

    # Tight check vs a reference using the same bf16 operand rounding (our output is
    # additionally rounded to bf16, hence the 2e-2 tolerance).
    y_ref_bf16 = conv_transpose_ref(x, weight, bias, dtype=jnp.bfloat16)
    assert jnp.allclose(y, y_ref_bf16, atol=2e-2, rtol=2e-2), "mismatch vs bf16 reference"
    # Loose check vs the exact f32 reference (error = intentional bf16 operand/output
    # rounding only).
    y_ref_f32 = conv_transpose_ref(x, weight, bias, dtype=jnp.float32)
    assert jnp.allclose(y, y_ref_f32, atol=8e-2, rtol=5e-2), "mismatch vs f32 reference"
    print("KERNEL_OK")
</pallas_src>

<mosaic_0001>
module attributes {stable_mosaic.version = 11 : i64} {
  func.func @_upconv_kernel(%arg0: i32, %arg1: i32, %arg2: memref<1x8x18x4xbf16, #tpu.memory_space<vmem>>, %arg3: memref<1x2x18x4xbf16, #tpu.memory_space<vmem>>, %arg4: memref<8x8x4xbf16, #tpu.memory_space<vmem>>, %arg5: memref<1x4xf32, #tpu.memory_space<vmem>>, %arg6: memref<1x8x16x16xbf16, #tpu.memory_space<vmem>>) attributes {dimension_semantics = [#tpu.dimension_semantics<parallel>, #tpu.dimension_semantics<parallel>], iteration_bounds = array<i64: 2, 2>, scalar_prefetch = 0 : i64, scratch_operands = 0 : i64, tpu.core_type = #tpu.core_type<tc>, window_params = [{transform_indices = @transform_0, window_bounds = array<i64: 1, 8, 18, 4>}, {transform_indices = @transform_1, window_bounds = array<i64: 1, 2, 18, 4>}, {pipeline_mode = #tpu.pipeline_mode<synchronous>, transform_indices = @transform_2, window_bounds = array<i64: 8, 8, 4>}, {pipeline_mode = #tpu.pipeline_mode<synchronous>, transform_indices = @transform_3, window_bounds = array<i64: 1, 4>}, {transform_indices = @transform_4, window_bounds = array<i64: 1, 8, 16, 16>}]} {
    %c0 = arith.constant 0 : index
    %c0_0 = arith.constant 0 : index
    %c0_1 = arith.constant 0 : index
    %c0_2 = arith.constant 0 : index
    %0 = vector.load %arg2[%c0, %c0_0, %c0_1, %c0_2] : memref<1x8x18x4xbf16, #tpu.memory_space<vmem>>, vector<1x8x18x4xbf16>
    %1 = vector.shape_cast %0 : vector<1x8x18x4xbf16> to vector<8x18x4xbf16>
    %c0_3 = arith.constant 0 : index
    %c0_4 = arith.constant 0 : index
    %c0_5 = arith.constant 0 : index
    %c0_6 = arith.constant 0 : index
    %2 = vector.load %arg3[%c0_3, %c0_4, %c0_5, %c0_6] : memref<1x2x18x4xbf16, #tpu.memory_space<vmem>>, vector<1x2x18x4xbf16>
    %3 = vector.shape_cast %2 : vector<1x2x18x4xbf16> to vector<2x18x4xbf16>
    %4 = tpu.concatenate %1, %3 in 0 : vector<8x18x4xbf16>, vector<2x18x4xbf16> -> vector<10x18x4xbf16>
    %c0_7 = arith.constant 0 : index
    %c0_8 = arith.constant 0 : index
    %5 = vector.load %arg5[%c0_7, %c0_8] : memref<1x4xf32, #tpu.memory_space<vmem>>, vector<1x4xf32>
    %6 = vector.extract_strided_slice %4 {offsets = [0, 0, 0], sizes = [10, 16, 4], strides = [1, 1, 1]} : vector<10x18x4xbf16> to vector<10x16x4xbf16>
    %7 = vector.extract_strided_slice %4 {offsets = [0, 1, 0], sizes = [10, 16, 4], strides = [1, 1, 1]} : vector<10x18x4xbf16> to vector<10x16x4xbf16>
    %8 = tpu.concatenate %6, %7 in 2 : vector<10x16x4xbf16>, vector<10x16x4xbf16> -> vector<10x16x8xbf16>
    %9 = vector.extract_strided_slice %8 {offsets = [0, 0, 0], sizes = [8, 16, 8], strides = [1, 1, 1]} : vector<10x16x8xbf16> to vector<8x16x8xbf16>
    %10 = vector.shape_cast %9 : vector<8x16x8xbf16> to vector<128x8xbf16>
    %11 = vector.extract_strided_slice %8 {offsets = [1, 0, 0], sizes = [8, 16, 8], strides = [1, 1, 1]} : vector<10x16x8xbf16> to vector<8x16x8xbf16>
    %12 = vector.shape_cast %11 : vector<8x16x8xbf16> to vector<128x8xbf16>
    %c0_9 = arith.constant 0 : index
    %c0_10 = arith.constant 0 : index
    %c0_11 = arith.constant 0 : index
    %13 = vector.load %arg4[%c0_9, %c0_10, %c0_11] : memref<8x8x4xbf16, #tpu.memory_space<vmem>>, vector<1x8x4xbf16>
    %14 = vector.shape_cast %13 : vector<1x8x4xbf16> to vector<8x4xbf16>
    %cst = arith.constant dense<0.000000e+00> : vector<128x4xf32>
    %15 = tpu.matmul %10, %14, %cst {dimension_numbers = #tpu.dot_dimension_numbers<[1], [0], [0], [1], [0, 0, 1, 1], [], []>} : vector<128x8xbf16>, vector<8x4xbf16>, vector<128x4xf32> -> vector<128x4xf32>
    %c1 = arith.constant 1 : index
    %c0_12 = arith.constant 0 : index
    %c0_13 = arith.constant 0 : index
    %16 = vector.load %arg4[%c1, %c0_12, %c0_13] : memref<8x8x4xbf16, #tpu.memory_space<vmem>>, vector<1x8x4xbf16>
    %17 = vector.shape_cast %16 : vector<1x8x4xbf16> to vector<8x4xbf16>
    %cst_14 = arith.constant dense<0.000000e+00> : vector<128x4xf32>
    %18 = tpu.matmul %12, %17, %cst_14 {dimension_numbers = #tpu.dot_dimension_numbers<[1], [0], [0], [1], [0, 0, 1, 1], [], []>} : vector<128x8xbf16>, vector<8x4xbf16>, vector<128x4xf32> -> vector<128x4xf32>
    %19 = arith.addf %15, %18 : vector<128x4xf32>
    %20 = vector.broadcast %5 : vector<1x4xf32> to vector<128x4xf32>
    %21 = arith.addf %19, %20 : vector<128x4xf32>
    %22 = vector.shape_cast %21 : vector<128x4xf32> to vector<8x16x4xf32>
    %23 = arith.truncf %22 : vector<8x16x4xf32> to vector<8x16x4xbf16>
    %c0_15 = arith.constant 0 : index
    %c0_16 = arith.constant 0 : index
    %c0_17 = arith.constant 0 : index
    %c0_18 = arith.constant 0 : index
    %24 = vector.load %arg6[%c0_15, %c0_16, %c0_17, %c0_18] : memref<1x8x16x16xbf16, #tpu.memory_space<vmem>>, vector<1x8x16x4xbf16>
    %25 = vector.shape_cast %24 : vector<1x8x16x4xbf16> to vector<8x16x4xbf16>
    %26 = vector.shape_cast %23 : vector<8x16x4xbf16> to vector<1x8x16x4xbf16>
    tpu.vector_store %arg6[%c0_15, %c0_16, %c0_17, %c0_18], %26 {strides = array<i32>} : memref<1x8x16x16xbf16, #tpu.memory_space<vmem>>, vector<1x8x16x4xbf16>,
    %27 = vector.extract_strided_slice %8 {offsets = [1, 0, 0], sizes = [8, 16, 8], strides = [1, 1, 1]} : vector<10x16x8xbf16> to vector<8x16x8xbf16>
    %28 = vector.shape_cast %27 : vector<8x16x8xbf16> to vector<128x8xbf16>
    %29 = vector.extract_strided_slice %8 {offsets = [2, 0, 0], sizes = [8, 16, 8], strides = [1, 1, 1]} : vector<10x16x8xbf16> to vector<8x16x8xbf16>
    %30 = vector.shape_cast %29 : vector<8x16x8xbf16> to vector<128x8xbf16>
    %c4 = arith.constant 4 : index
    %c0_19 = arith.constant 0 : index
    %c0_20 = arith.constant 0 : index
    %31 = vector.load %arg4[%c4, %c0_19, %c0_20] : memref<8x8x4xbf16, #tpu.memory_space<vmem>>, vector<1x8x4xbf16>
    %32 = vector.shape_cast %31 : vector<1x8x4xbf16> to vector<8x4xbf16>
    %cst_21 = arith.constant dense<0.000000e+00> : vector<128x4xf32>
    %33 = tpu.matmul %28, %32, %cst_21 {dimension_numbers = #tpu.dot_dimension_numbers<[1], [0], [0], [1], [0, 0, 1, 1], [], []>} : vector<128x8xbf16>, vector<8x4xbf16>, vector<128x4xf32> -> vector<128x4xf32>
    %c5 = arith.constant 5 : index
    %c0_22 = arith.constant 0 : index
    %c0_23 = arith.constant 0 : index
    %34 = vector.load %arg4[%c5, %c0_22, %c0_23] : memref<8x8x4xbf16, #tpu.memory_space<vmem>>, vector<1x8x4xbf16>
    %35 = vector.shape_cast %34 : vector<1x8x4xbf16> to vector<8x4xbf16>
    %cst_24 = arith.constant dense<0.000000e+00> : vector<128x4xf32>
    %36 = tpu.matmul %30, %35, %cst_24 {dimension_numbers = #tpu.dot_dimension_numbers<[1], [0], [0], [1], [0, 0, 1, 1], [], []>} : vector<128x8xbf16>, vector<8x4xbf16>, vector<128x4xf32> -> vector<128x4xf32>
    %37 = arith.addf %33, %36 : vector<128x4xf32>
    %38 = vector.broadcast %5 : vector<1x4xf32> to vector<128x4xf32>
    %39 = arith.addf %37, %38 : vector<128x4xf32>
    %40 = vector.shape_cast %39 : vector<128x4xf32> to vector<8x16x4xf32>
    %41 = arith.truncf %40 : vector<8x16x4xf32> to vector<8x16x4xbf16>
    %c0_25 = arith.constant 0 : index
    %c0_26 = arith.constant 0 : index
    %c0_27 = arith.constant 0 : index
    %c8 = arith.constant 8 : index
    %42 = vector.load %arg6[%c0_25, %c0_26, %c0_27, %c8] : memref<1x8x16x16xbf16, #tpu.memory_space<vmem>>, vector<1x8x16x4xbf16>
    %43 = vector.shape_cast %42 : vector<1x8x16x4xbf16> to vector<8x16x4xbf16>
    %44 = vector.shape_cast %41 : vector<8x16x4xbf16> to vector<1x8x16x4xbf16>
    tpu.vector_store %arg6[%c0_25, %c0_26, %c0_27, %c8], %44 {strides = array<i32>} : memref<1x8x16x16xbf16, #tpu.memory_space<vmem>>, vector<1x8x16x4xbf16>,
    %45 = vector.extract_strided_slice %4 {offsets = [0, 1, 0], sizes = [10, 16, 4], strides = [1, 1, 1]} : vector<10x18x4xbf16> to vector<10x16x4xbf16>
    %46 = vector.extract_strided_slice %4 {offsets = [0, 2, 0], sizes = [10, 16, 4], strides = [1, 1, 1]} : vector<10x18x4xbf16> to vector<10x16x4xbf16>
    %47 = tpu.concatenate %45, %46 in 2 : vector<10x16x4xbf16>, vector<10x16x4xbf16> -> vector<10x16x8xbf16>
    %48 = vector.extract_strided_slice %47 {offsets = [0, 0, 0], sizes = [8, 16, 8], strides = [1, 1, 1]} : vector<10x16x8xbf16> to vector<8x16x8xbf16>
    %49 = vector.shape_cast %48 : vector<8x16x8xbf16> to vector<128x8xbf16>
    %50 = vector.extract_strided_slice %47 {offsets = [1, 0, 0], sizes = [8, 16, 8], strides = [1, 1, 1]} : vector<10x16x8xbf16> to vector<8x16x8xbf16>
    %51 = vector.shape_cast %50 : vector<8x16x8xbf16> to vector<128x8xbf16>
    %c2 = arith.constant 2 : index
    %c0_28 = arith.constant 0 : index
    %c0_29 = arith.constant 0 : index
    %52 = vector.load %arg4[%c2, %c0_28, %c0_29] : memref<8x8x4xbf16, #tpu.memory_space<vmem>>, vector<1x8x4xbf16>
    %53 = vector.shape_cast %52 : vector<1x8x4xbf16> to vector<8x4xbf16>
    %cst_30 = arith.constant dense<0.000000e+00> : vector<128x4xf32>
    %54 = tpu.matmul %49, %53, %cst_30 {dimension_numbers = #tpu.dot_dimension_numbers<[1], [0], [0], [1], [0, 0, 1, 1], [], []>} : vector<128x8xbf16>, vector<8x4xbf16>, vector<128x4xf32> -> vector<128x4xf32>
    %c3 = arith.constant 3 : index
    %c0_31 = arith.constant 0 : index
    %c0_32 = arith.constant 0 : index
    %55 = vector.load %arg4[%c3, %c0_31, %c0_32] : memref<8x8x4xbf16, #tpu.memory_space<vmem>>, vector<1x8x4xbf16>
    %56 = vector.shape_cast %55 : vector<1x8x4xbf16> to vector<8x4xbf16>
    %cst_33 = arith.constant dense<0.000000e+00> : vector<128x4xf32>
    %57 = tpu.matmul %51, %56, %cst_33 {dimension_numbers = #tpu.dot_dimension_numbers<[1], [0], [0], [1], [0, 0, 1, 1], [], []>} : vector<128x8xbf16>, vector<8x4xbf16>, vector<128x4xf32> -> vector<128x4xf32>
    %58 = arith.addf %54, %57 : vector<128x4xf32>
    %59 = vector.broadcast %5 : vector<1x4xf32> to vector<128x4xf32>
    %60 = arith.addf %58, %59 : vector<128x4xf32>
    %61 = vector.shape_cast %60 : vector<128x4xf32> to vector<8x16x4xf32>
    %62 = arith.truncf %61 : vector<8x16x4xf32> to vector<8x16x4xbf16>
    %c0_34 = arith.constant 0 : index
    %c0_35 = arith.constant 0 : index
    %c0_36 = arith.constant 0 : index
    %c4_37 = arith.constant 4 : index
    %63 = vector.load %arg6[%c0_34, %c0_35, %c0_36, %c4_37] : memref<1x8x16x16xbf16, #tpu.memory_space<vmem>>, vector<1x8x16x4xbf16>
    %64 = vector.shape_cast %63 : vector<1x8x16x4xbf16> to vector<8x16x4xbf16>
    %65 = vector.shape_cast %62 : vector<8x16x4xbf16> to vector<1x8x16x4xbf16>
    tpu.vector_store %arg6[%c0_34, %c0_35, %c0_36, %c4_37], %65 {strides = array<i32>} : memref<1x8x16x16xbf16, #tpu.memory_space<vmem>>, vector<1x8x16x4xbf16>,
    %66 = vector.extract_strided_slice %47 {offsets = [1, 0, 0], sizes = [8, 16, 8], strides = [1, 1, 1]} : vector<10x16x8xbf16> to vector<8x16x8xbf16>
    %67 = vector.shape_cast %66 : vector<8x16x8xbf16> to vector<128x8xbf16>
    %68 = vector.extract_strided_slice %47 {offsets = [2, 0, 0], sizes = [8, 16, 8], strides = [1, 1, 1]} : vector<10x16x8xbf16> to vector<8x16x8xbf16>
    %69 = vector.shape_cast %68 : vector<8x16x8xbf16> to vector<128x8xbf16>
    %c6 = arith.constant 6 : index
    %c0_38 = arith.constant 0 : index
    %c0_39 = arith.constant 0 : index
    %70 = vector.load %arg4[%c6, %c0_38, %c0_39] : memref<8x8x4xbf16, #tpu.memory_space<vmem>>, vector<1x8x4xbf16>
    %71 = vector.shape_cast %70 : vector<1x8x4xbf16> to vector<8x4xbf16>
    %cst_40 = arith.constant dense<0.000000e+00> : vector<128x4xf32>
    %72 = tpu.matmul %67, %71, %cst_40 {dimension_numbers = #tpu.dot_dimension_numbers<[1], [0], [0], [1], [0, 0, 1, 1], [], []>} : vector<128x8xbf16>, vector<8x4xbf16>, vector<128x4xf32> -> vector<128x4xf32>
    %c7 = arith.constant 7 : index
    %c0_41 = arith.constant 0 : index
    %c0_42 = arith.constant 0 : index
    %73 = vector.load %arg4[%c7, %c0_41, %c0_42] : memref<8x8x4xbf16, #tpu.memory_space<vmem>>, vector<1x8x4xbf16>
    %74 = vector.shape_cast %73 : vector<1x8x4xbf16> to vector<8x4xbf16>
    %cst_43 = arith.constant dense<0.000000e+00> : vector<128x4xf32>
    %75 = tpu.matmul %69, %74, %cst_43 {dimension_numbers = #tpu.dot_dimension_numbers<[1], [0], [0], [1], [0, 0, 1, 1], [], []>} : vector<128x8xbf16>, vector<8x4xbf16>, vector<128x4xf32> -> vector<128x4xf32>
    %76 = arith.addf %72, %75 : vector<128x4xf32>
    %77 = vector.broadcast %5 : vector<1x4xf32> to vector<128x4xf32>
    %78 = arith.addf %76, %77 : vector<128x4xf32>
    %79 = vector.shape_cast %78 : vector<128x4xf32> to vector<8x16x4xf32>
    %80 = arith.truncf %79 : vector<8x16x4xf32> to vector<8x16x4xbf16>
    %c0_44 = arith.constant 0 : index
    %c0_45 = arith.constant 0 : index
    %c0_46 = arith.constant 0 : index
    %c12 = arith.constant 12 : index
    %81 = vector.load %arg6[%c0_44, %c0_45, %c0_46, %c12] : memref<1x8x16x16xbf16, #tpu.memory_space<vmem>>, vector<1x8x16x4xbf16>
    %82 = vector.shape_cast %81 : vector<1x8x16x4xbf16> to vector<8x16x4xbf16>
    %83 = vector.shape_cast %80 : vector<8x16x4xbf16> to vector<1x8x16x4xbf16>
    tpu.vector_store %arg6[%c0_44, %c0_45, %c0_46, %c12], %83 {strides = array<i32>} : memref<1x8x16x16xbf16, #tpu.memory_space<vmem>>, vector<1x8x16x4xbf16>,
    return
  }
  func.func @transform_0(%arg0: i32, %arg1: i32) -> (i32, i32, i32, i32) {
    %c0_i32 = arith.constant 0 : i32
    %c0_i32_0 = arith.constant 0 : i32
    %c0_i32_1 = arith.constant 0 : i32
    return %arg0, %arg1, %c0_i32, %c0_i32_0 : i32, i32, i32, i32
  }
  func.func @transform_1(%arg0: i32, %arg1: i32) -> (i32, i32, i32, i32) {
    %c1_i32 = arith.constant 1 : i32
    %0 = arith.addi %arg1, %c1_i32 : i32
    %c4_i32 = arith.constant 4 : i32
    %1 = arith.muli %0, %c4_i32 : i32
    %c0_i32 = arith.constant 0 : i32
    %c0_i32_0 = arith.constant 0 : i32
    %c0_i32_1 = arith.constant 0 : i32
    return %arg0, %1, %c0_i32, %c0_i32_0 : i32, i32, i32, i32
  }
  func.func @transform_2(%arg0: i32, %arg1: i32) -> (i32, i32, i32) {
    %c0_i32 = arith.constant 0 : i32
    %c0_i32_0 = arith.constant 0 : i32
    %c0_i32_1 = arith.constant 0 : i32
    %c0_i32_2 = arith.constant 0 : i32
    return %c0_i32, %c0_i32_0, %c0_i32_1 : i32, i32, i32
  }
  func.func @transform_3(%arg0: i32, %arg1: i32) -> (i32, i32) {
    %c0_i32 = arith.constant 0 : i32
    %c0_i32_0 = arith.constant 0 : i32
    %c0_i32_1 = arith.constant 0 : i32
    return %c0_i32, %c0_i32_0 : i32, i32
  }
  func.func @transform_4(%arg0: i32, %arg1: i32) -> (i32, i32, i32, i32) {
    %c0_i32 = arith.constant 0 : i32
    %c0_i32_0 = arith.constant 0 : i32
    %c0_i32_1 = arith.constant 0 : i32
    return %arg0, %arg1, %c0_i32, %c0_i32_0 : i32, i32, i32, i32
  }
}

</mosaic_0001>

<bundles_post_ra>
// kernel: tpu_custom_call.1
= control target key start
LH: loop header
LB: loop body
LE: loop exit
PB: predicated region body
PF: predicated region fallthrough
CT: control target
= control target key end

     0   :  { %9 = vsyncpa [#allocation3], 0  ;;  %s3681_s0 = inlined_call_operand.vmem [shape: bf16[2,18,18,4], index: 0, kind: input, shape index: {}]   ;;  %s3682_s1 = inlined_call_operand.vmem [shape: bf16[2,18,18,4], index: 1, kind: input, shape index: {}]   ;;  %s3683_s2 = inlined_call_operand.vmem [shape: bf16[8,8,4], index: 2, kind: input, shape index: {}]   ;;  %s3684_s3 = inlined_call_operand.vmem [shape: f32[1,4], index: 3, kind: input, shape index: {}]   ;;  %s3685_s4 = inlined_call_operand.hbm [shape: bf16[2,16,16,16], index: 4, kind: output, shape index: {}]  }
   0x1   :  { %11 = vsyncpa [#allocation3 + $0x1], 0  ;;  %s2918_s15 = smov 0   ;;  %s2920_s16 = smov 0  }
   0x2   :  { %s2922_s17 = smov 0   ;;  %s2924_s18 = smov 0  }
   0x3   :  { %s2926_s19 = smov 0   ;;  %s2928_s20 = smov 0  }
   0x4   :  { %s2930_s21 = smov 0   ;;  %s2932_s22 = smov 0  }
   0x5 LB: > { %s2222_s23 = sadd.s32 4294967295, %s2886_s22   ;;  %s2223_s24 = sadd.s32 4294967294, %s2886_s22   ;;  %s2886_s22 = sphi %s2932_s22, %s17_s22   ;;  %s2882_s21 = sphi %s2930_s21, %s3694_s21   ;;  %s2878_s20 = sphi %s2928_s20, %s3693_s20   ;;  %s2874_s19 = sphi %s2926_s19, %s3692_s19   ;;  %s2870_s18 = sphi %s2924_s18, %s3691_s18   ;;  %s2866_s17 = sphi %s2922_s17, %s3690_s17   ;;  %s2862_s16 = sphi %s2920_s16, %s3689_s16   ;;  %s2858_s15 = sphi %s2918_s15, %s3688_s15  }
   0x6   : > { %s26_s25 = sadd.s32 1, %s2878_s20  ;;  %s29_s26 = sadd.s32 1, %s2882_s21 }
   0x7   : > { %p27_p0 = scmp.ge.s32.totalorder %s26_s25, 2  ;;  %p150_p1 = scmp.ne.s32.totalorder %s2866_s17, %s2862_s16 }
   0x8   : > { %p151_p2 = scmp.eq.s32.totalorder %s2222_s23, 3  ;;  %p156_p5 = scmp.ne.s32.totalorder %s2862_s16, %s2858_s15 }
   0x9   : > { %s3696_s25 = smov (%p27_p0, %s26_s25), 0  ;;  %s3698_s26 = smov (!%p27_p0, %s29_s26), %s2882_s21 }
   0xa   : > { %s136_s27 = ssub.s32 %s2878_s20, %s3696_s25  ;;  %p2969_p3 = por %p151_p2, %p150_p1 }
   0xb   : > { %p31_p4 = scmp.ge.s32.totalorder %s3698_s26, 2  ;;  %p157_p6 = scmp.eq.s32.totalorder %s2223_s24, 3 }
   0xc   : > { %p2228_p7 = scmp.ge.s32.totalorder %s2886_s22, 1  ;;  %p223_p9 = scmp.lt.s32.totalorder %s2886_s22, 5 }
   0xd   : > { %s3700_s26 = smov (%p31_p4, %s3698_s26), 0  ;;  %p2978_p8 = por %p157_p6, %p156_p5 }
   0xe   : > { %s135_s30 = ssub.s32 %s2882_s21, %s3700_s26  ;;  %s140_s5 = sadd.s32 1, %s2866_s17 }
   0xf   : > { %s137_s6 = sor.u32 %s136_s27, %s135_s30  ;;  %p224_p10 = pnand %p2228_p7, %p223_p9 }
  0x10   : > { %p138_p11 = scmp.eq.s32.totalorder %s137_s6, 0  ;;  %s2230_s8 = sshll.u32 (!%p224_p10), %s2870_s18, 3 }
  0x11   : > { %227 = sbr.rel (%p224_p10) target bundleno = 618 (0x26a), region = 36  ;;  %p277_p12 = scmp.lt.s32.totalorder (!%p224_p10), %s2874_s19, 1 }
  0x12   : > { %s2987_s7 = scalar_select %p138_p11, %s2866_s17, %s140_s5  }
  0x13   : > { %p279_p13 = scmp.lt.s32.totalorder (!%p224_p10), %s2230_s8, 17  ;;  %s2471_s13 = sadd.s32 (!%p224_p10), 8, %s2230_s8 }
  0x14   : > { %p297_p0 = scmp.lt.s32.totalorder (!%p224_p10), %s2471_s13, 17  ;;  %s2888_s5 = smov (!%p224_p10), 4  }
  0x15   : > { %s268_s27 = sand.u32 (!%p224_p10), 1, %s2862_s16  }
  0x16   : > { %s2992_s9 = scalar_select %p277_p12, %s2874_s19, 1  ;;  %vm420_vm0 = vsmask.f32 7424  ;;  %vm602_vm1 = vcmask 1043456   ;;  %vm561_vm2 = vcmask 31744   ;;  %vm585_vm3 = vcmask 64512  }
  0x17   : > { %s280_s10 = scalar_select %p279_p13, %s2230_s8, 17  ;;  %vm891_vm4 = vcmask 27648   ;;  %vm1226_vm5 = vcmask 93248   ;;  %vm1736_vm6 = vcmask 60448   ;;  %vm2082_vm7 = vcmask 126048  }
  0x18   : > { %s2697_s11 = smul.u32 54, %s2992_s9  ;;  %s3702_s13 = smov (!%p297_p0, %s2471_s13), 17 }
  0x19   : > { %s2696_s12 = smul.u32 3, %s280_s10  ;;  %s2394_s9 = sshll.u32 %s2874_s19, 5 }
  0x1a   : > { %s2698_s6 = smul.u32 3, %s3702_s13 }
  0x1b   : > { %s283_s14 = sadd.s32 %s2697_s11, %s2696_s12  ;;  %s2889_s12 = smov 8  }
  0x1c   : > { %s2231_s23 = sshll.u32 %s283_s14, 2  ;;  %s301_s8 = sadd.s32 %s2698_s6, %s2697_s11 }
  0x1d   : > { %s3000_s30 = scalar_lea.vmem %s3681_s0, %s2231_s23  ;;  %s2234_s10 = sshll.u32 %s301_s8, 2 }
  0x1e   : > { %v3003_v0 = vld [vmem:[%s3000_s30 + $0x18] sm:$0xff]   ;;  %v3006_v1 = vld [vmem:[%s3000_s30 + $0x20] ss:$0 sps:$4 sm:$0x11]   ;;  %v3023_v12 = vld [vmem:[%s3000_s30 + $0x24] sm:$0xff]   ;;  %s303_s13 = scalar_lea.vmem %s3682_s1, %s2234_s10  ;;  %s2229_s8 = sshll.u32 %s268_s27, 6 }
  0x1f   : > { %v3009_v2 = vld [vmem:[%s3000_s30] sm:$0xff]   ;;  %v446_v3 = vshrl.u32 %v3003_v0, 16  ;;  %v448_v4 = vshll.u32 %v3003_v0, 16  ;;  %v453_v5 = vshll.u32 %v3006_v1, 16  ;;  %v458_v17 = vshrl.u32 %v3023_v12, 16  ;;  %v3031_v19 = vld [vmem:[%s3000_s30 + $0xc] sm:$0xff]  }
  0x20   : > { %v3017_v6 = vld [vmem:[%s3000_s30 + $0x8] ss:$0 sps:$4 sm:$0x11]   ;;  %v422_v7 = vshrl.u32 %v3009_v2, 16  ;;  %v424_v8 = vshll.u32 %v3009_v2, 16  ;;  %v460_v18 = vshll.u32 %v3023_v12, 16 }
  0x21   : > { %v450_v9 = vrot.slane %v448_v4, 1  ;;  %v455_v10 = vrot.slane %v453_v5, 1  ;;  %v429_v11 = vshll.u32 %v3017_v6, 16  ;;  %v3026_v14 = vld [vmem:[%s3000_s30 + $0x2c] ss:$0 sps:$4 sm:$0x11]  }
  0x22   : > { %v426_v13 = vrot.slane %v424_v8, 1  ;;  %v465_v21 = vshll.u32 %v3026_v14, 16  ;;  %v3035_v22 = vld [vmem:[%s3000_s30 + $0x14] ss:$0 sps:$4 sm:$0x11]   ;;  %v462_v24 = vrot.slane %v460_v18, 1 }
  0x23   : > { %v451_v15 = vor.u32 %v450_v9, %v446_v3  ;;  %v431_v16 = vrot.slane %v429_v11, 1  ;;  %v434_v25 = vshrl.u32 %v3031_v19, 16  ;;  %v436_v26 = vshll.u32 %v3031_v19, 16  ;;  %v3041_v27 = vld [vmem:[%s3000_s30 + $0x3c] sm:$0xff]   ;;  %v3053_v37 = vld [vmem:[%s3000_s30 + $0x30] sm:$0xff]   ;;  %v3068_v49 = vld [vmem:[%s3000_s30 + $0x48] sm:$0xff]  }
  0x24   : > { %v427_v20 = vor.u32 %v426_v13, %v422_v7  ;;  %v467_v29 = vrot.slane %v465_v21, 1  ;;  %v441_v30 = vshll.u32 %v3035_v22, 16  ;;  %v463_v31 = vor.u32 %v462_v24, %v458_v17  ;;  %v3048_v33 = vld [vmem:[%s3000_s30 + $0x44] ss:$0 sps:$4 sm:$0x11]   ;;  %v3064_v45 = vld [vmem:[%s3000_s30 + $0x54] sm:$0xff]  }
  0x25   : > { %v456_v23 = vsel %vm420_vm0, %v451_v15, %v455_v10  ;;  %v438_v32 = vrot.slane %v436_v26, 1  ;;  %v482_v34 = vshrl.u32 %v3041_v27, 16  ;;  %v484_v35 = vshll.u32 %v3041_v27, 16  ;;  %v3059_v42 = vld [vmem:[%s3000_s30 + $0x38] ss:$0 sps:$4 sm:$0x11]  }
  0x26   : > { %545 = vrot.lane.b32.xlu1 %v456_v23, %s2888_s5  ;;  %v432_v28 = vsel %vm420_vm0, %v427_v20, %v431_v16  ;;  %v443_v36 = vrot.slane %v441_v30, 1  ;;  %v468_v38 = vsel %vm420_vm0, %v463_v31, %v467_v29  ;;  %v489_v41 = vshll.u32 %v3048_v33, 16  ;;  %v3073_v52 = vld [vmem:[%s3000_s30 + $0x5c] ss:$0 sps:$4 sm:$0x11]   ;;  %v3095_v11 = vld [vmem:[%s303_s13 + $0xc] sm:$0xff]  }
  0x27   : > { %541 = vrot.lane.b32.xlu0 %v432_v28, %s2888_s5  ;;  %v439_v39 = vor.u32 %v438_v32, %v434_v25  ;;  %v486_v40 = vrot.slane %v484_v35, 1  ;;  %v470_v43 = vshrl.u32 %v3053_v37, 16  ;;  %v472_v44 = vshll.u32 %v3053_v37, 16  ;;  %v3084_v62 = vld [vmem:[%s3000_s30 + $0x50] ss:$0 sps:$4 sm:$0x11]  }
  0x28   : > { %v491_v48 = vrot.slane %v489_v41, 1  ;;  %v477_v51 = vshll.u32 %v3059_v42, 16  ;;  %v506_v53 = vshrl.u32 %v3064_v45, 16  ;;  %v508_v55 = vshll.u32 %v3064_v45, 16  ;;  %v3100_v15 = vld [vmem:[%s303_s13] sm:$0xff]   ;;  %s3378_s10 = scalar_lea.vmem [#allocation2], %s2229_s8 }
  0x29   : > { %v444_v46 = vsel %vm420_vm0, %v439_v39, %v443_v36  ;;  %v487_v47 = vor.u32 %v486_v40, %v482_v34  ;;  %v474_v50 = vrot.slane %v472_v44, 1  ;;  %v494_v56 = vshrl.u32 %v3068_v49, 16  ;;  %v3098_v13 = vld [vmem:[%s303_s13 + $0x14] ss:$0 sps:$4 sm:$0x11]   ;;  %s2890_s14 = smov 12  }
  0x2a   : > { %547 = vrot.lane.b32.xlu1 %v468_v38, %s2888_s5  ;;  %v479_v58 = vrot.slane %v477_v51, 1  ;;  %v513_v59 = vshll.u32 %v3073_v52, 16  ;;  %v496_v60 = vshll.u32 %v3068_v49, 16  ;;  %v510_v61 = vrot.slane %v508_v55, 1  ;;  %v2255_v16 = vld [vmem:[%s3683_s2 + $0x4] sm:$0xf] }
  0x2b   : > { %543 = vrot.lane.b32.xlu0 %v444_v46, %s2888_s5  ;;  %v492_v54 = vsel %vm420_vm0, %v487_v47, %v491_v48  ;;  %v475_v57 = vor.u32 %v474_v50, %v470_v43  ;;  %v501_v7 = vshll.u32 %v3084_v62, 16  ;;  %v582_v17 = vld [vmem:[%s3683_s2] sm:$0xf]  ;;  %v530_v20 = vshrl.u32 %v3095_v11, 16  ;;  %v2290_v31 = vld [vmem:[%s3683_s2 + $0x14] sm:$0xf]  ;;  %2688 = vmatprep.subr.msk.bf16.mxu0 %vm602_vm1, %v2255_v16 }
  0x2c   : > { %v515_v3 = vrot.slane %v513_v59, 1  ;;  %v498_v4 = vrot.slane %v496_v60, 1  ;;  %v511_v5 = vor.u32 %v510_v61, %v506_v53  ;;  %v532_v21 = vshll.u32 %v3095_v11, 16  ;;  %v3113_v24 = vld [vmem:[%s303_s13 + $0x8] ss:$0 sps:$4 sm:$0x11]   ;;  %2689 = vmatprep.subr.msk.bf16.mxu1 %vm602_vm1, %v582_v17 }
  0x2d   : > { %v480_v63 = vsel %vm420_vm0, %v475_v57, %v479_v58  ;;  %v503_v10 = vrot.slane %v501_v7, 1  ;;  %v537_v23 = vshll.u32 %v3098_v13, 16  ;;  %v518_v26 = vshrl.u32 %v3100_v15, 16  ;;  %v2289_v36 = vld [vmem:[%s3683_s2 + $0x10] sm:$0xf]  ;;  %s2469_s13 = sshll.u32 %s2870_s18, 4 }
  0x2e   : > { %551 = vrot.lane.b32.xlu1 %v492_v54, %s2888_s5  ;;  %v499_v8 = vor.u32 %v498_v4, %v494_v56  ;;  %v516_v9 = vsel %vm420_vm0, %v511_v5, %v515_v3  ;;  %v534_v25 = vrot.slane %v532_v21, 1  ;;  %v520_v28 = vshll.u32 %v3100_v15, 16  ;;  %s2113_s11 = sadd.s32 %s2469_s13, %s2394_s9  ;;  %s2116_s23 = sshll.u32 %s3378_s10, 4  ;;  %s3618_s23 = int_to_ptr.vmem [resolvable:$true] %s2116_s23 }
  0x2f   : > { %549 = vrot.lane.b32.xlu0 %v480_v63, %s2888_s5  ;;  %v539_v29 = vrot.slane %v537_v23, 1  ;;  %v525_v30 = vshll.u32 %v3113_v24, 16  ;;  %v604_v35 = vsel %vm602_vm1, %v2255_v16, 0  ;;  %v706_v39 = vsel %vm602_vm1, %v582_v17, 0  ;;  %s2395_s24 = sshll.u32 %s2113_s11, 6  ;;  %s3629_s6 = scalar_lea.sflag [#allocation3], %s268_s27 }
  0x30   : > { %v504_v18 = vsel %vm420_vm0, %v499_v8, %v503_v10  ;;  %v535_v32 = vor.u32 %v534_v25, %v530_v20  ;;  %v522_v34 = vrot.slane %v520_v28, 1  ;;  %2545 = vmatpush3.bf16.msra.mxu0 %v604_v35  ;;  %2563 = vmatpush3.bf16.msra.mxu1 %v706_v39  ;;  %v1245_v43 = vshrl.u32 %v3035_v22, 16  ;;  %v2357_v20 = vld [vmem:[%s3683_s2 + $0x18] sm:$0xf]  ;;  %s3623_s19 = scalar_lea.hbm %s3685_s4, %s2395_s24  ;;  %s2794_s8 = scalar_lea.vmem %s3618_s23, 1024 }
  0x31   : > { %v527_v38 = vrot.slane %v525_v30, 1  ;;  %2690 = vmatprep.subr.msk.bf16.mxu0 %vm602_vm1, %v2290_v31  ;;  %2691 = vmatprep.subr.msk.bf16.mxu1 %vm602_vm1, %v2289_v36  ;;  %v1243_v46 = vshrl.u32 %v3017_v6, 16  ;;  %v1249_v47 = vshrl.u32 %v3026_v14, 16  ;;  %v1247_v48 = vshrl.u32 %v3006_v1, 16  ;;  %p2795_p1 = scmp.ne.s32.totalorder %s3618_s23, %s2794_s8 }
  0x32   : > { %555 = vrot.lane.b32.xlu1 %v516_v9, %s2888_s5  ;;  %v540_v40 = vsel %vm420_vm0, %v535_v32, %v539_v29  ;;  %v523_v41 = vor.u32 %v522_v34, %v518_v26  ;;  %v1253_v50 = vshrl.u32 %v3048_v33, 16  ;;  %v1251_v51 = vshrl.u32 %v3059_v42, 16 }
  0x33   : > { %553 = vrot.lane.b32.xlu0 %v504_v18, %s2888_s5  ;;  %v1257_v53 = vshrl.u32 %v3073_v52, 16  ;;  %v1255_v54 = vshrl.u32 %v3084_v62, 16  ;;  %v1261_v55 = vshrl.u32 %v3098_v13, 16  ;;  %v1259_v56 = vshrl.u32 %v3113_v24, 16  ;;  %p2796_p2 = pnand %p2795_p1, %p2969_p3 }
  0x34   : > { %v528_v44 = vsel %vm420_vm0, %v523_v41, %v527_v38  ;;  %v915_v63 = vsel %vm602_vm1, %v2290_v31, 0  ;;  %v1015_v3 = vsel %vm602_vm1, %v2289_v36, 0 }
  0x35   : > { %p2797_p4 = pneg %p2796_p2 }
  0x36   : > { %559 = vrot.lane.b32.xlu1 %v540_v40, %s2888_s5 }
  0x37   : > { %557 = vrot.lane.b32.xlu0 %v528_v44, %s2888_s5 }
  0x3a   : > { %1265 = vrot.lane.b32.xlu1 %v1245_v43, %s2888_s5 }
  0x3b   : > { %1263 = vrot.lane.b32.xlu0 %v1243_v46, %s2888_s5 }
  0x3e   : > { %1269 = vrot.lane.b32.xlu1 %v1249_v47, %s2888_s5 }
  0x3f   : > { %1267 = vrot.lane.b32.xlu0 %v1247_v48, %s2888_s5 }
  0x42   : > { %1273 = vrot.lane.b32.xlu1 %v1253_v50, %s2888_s5 }
  0x43   : > { %1271 = vrot.lane.b32.xlu0 %v1251_v51, %s2888_s5 }
  0x46   : > { %1277 = vrot.lane.b32.xlu1 %v1257_v53, %s2888_s5 }
  0x47   : > { %1275 = vrot.lane.b32.xlu0 %v1255_v54, %s2888_s5 }
  0x4a   : > { %1281 = vrot.lane.b32.xlu1 %v1261_v55, %s2888_s5 }
  0x4b   : > { %1279 = vrot.lane.b32.xlu0 %v1259_v56, %s2888_s5 }
  0x98   : > { %v546_v59 = vpop.permute.xlu1 %545 }
  0x99   : > { %v542_v57 = vpop.permute.xlu0 %541  ;;  %v3168_v4 = vsel %vm561_vm2, %v3003_v0, %v546_v59  ;;  %v2323_v0 = vld [vmem:[%s3683_s2 + $0x8] sm:$0xf] }
  0x9a   : > { %v3156_v58 = vsel %vm561_vm2, %v3009_v2, %v542_v57  ;;  %v2324_v2 = vld [vmem:[%s3683_s2 + $0xc] sm:$0xf]  ;;  %v1525_v18 = vsel %vm602_vm1, %v2323_v0, 0  ;;  %v1325_v43 = vshll.u32 %v3168_v4, 16 }
  0x9b   : > { %2564 = vmatprep.mubr.msk.bf16.mxu1 %vm585_vm3, %v3156_v58  ;;  %v1305_v28 = vshll.u32 %v3156_v58, 16 }
  0x9d   : > { %v544_v60 = vpop.permute.xlu0 %543  ;;  %v1307_v34 = vrot.slane %v1305_v28, 1 }
  0x9e   : > { %v3162_v61 = vsel %vm561_vm2, %v3031_v19, %v544_v60  ;;  %v548_v19 = vpop.permute.xlu1 %547 }
  0x9f   : > { %2546 = vmatprep.mubr.msk.bf16.mxu0 %vm585_vm3, %v3162_v61  ;;  %2565 = vmatmul.mubr.msk.bf16.vlgmr.msra.gmra.mxu1 %vm585_vm3, %v3162_v61  ;;  %v3186_v5 = vsel %vm561_vm2, %v3023_v12, %v548_v19  ;;  %v1315_v30 = vshll.u32 %v3162_v61, 16  ;;  %v1313_v39 = vshrl.u32 %v3162_v61, 16  ;;  %v1871_v19 = vsel %vm602_vm1, %v2357_v20, 0 }
  0xa0   : > { %2547 = vmatmul.mubr.msk.bf16.vlgmr.msra.gmra.mxu0 %vm585_vm3, %v3168_v4  ;;  %2568 = vmatprep.mubr.msk.bf16.mxu1 %vm585_vm3, %v3168_v4  ;;  %v1335_v53 = vshll.u32 %v3186_v5, 16 }
  0xa1   : > { %2581 = vmatpush3.bf16.msra.mxu0 %v915_v63  ;;  %2599 = vmatpush3.bf16.msra.mxu1 %v1015_v3  ;;  %v550_v7 = vpop.permute.xlu0 %549  ;;  %v1317_v35 = vrot.slane %v1315_v30, 1 }
  0xa2   : > { %2550 = vmatprep.mubr.msk.bf16.mxu0 %vm585_vm3, %v3186_v5  ;;  %2692 = vmatprep.subr.msk.bf16.mxu0 %vm602_vm1, %v2324_v2  ;;  %v552_v8 = vpop.permute.xlu1 %551  ;;  %v3194_v9 = vsel %vm561_vm2, %v3053_v37, %v550_v7  ;;  %v1337_v59 = vrot.slane %v1335_v53, 1 }
  0xa3   : > { %2693 = vmatprep.subr.msk.bf16.mxu1 %vm602_vm1, %v2323_v0  ;;  %v3200_v12 = vsel %vm561_vm2, %v3041_v27, %v552_v8  ;;  %v1318_v47 = vor.u32 %v1317_v35, %v1313_v39 }
  0xa4   : > { %v1355_v0 = vshll.u32 %v3200_v12, 16 }
  0xa5   : > { %v554_v10 = vpop.permute.xlu0 %553 }
  0xa6   : > { %v556_v16 = vpop.permute.xlu1 %555  ;;  %v3210_v37 = vsel %vm561_vm2, %v3068_v49, %v554_v10 }
  0xa7   : > { %2569 = vmatmul.mubr.msk.bf16.gmra.mxu1 %vm585_vm3, %v3186_v5  ;;  %v3216_v27 = vsel %vm561_vm2, %v3064_v45, %v556_v16  ;;  %v1422_v45 = vsel %vm602_vm1, %v2324_v2, 0  ;;  %v1343_v16 = vshrl.u32 %v3194_v9, 16  ;;  %v1365_v28 = vshll.u32 %v3210_v37, 16 }
  0xa8   : > { %2551 = vmatmul.mubr.msk.bf16.gmra.mxu0 %vm585_vm3, %v3194_v9  ;;  %2572 = vmatprep.mubr.msk.bf16.mxu1 %vm585_vm3, %v3194_v9 }
  0xa9   : > { %2554 = vmatprep.mubr.msk.bf16.mxu0 %vm585_vm3, %v3200_v12  ;;  %v558_v17 = vpop.permute.xlu0 %557 }
  0xaa   : > { %v3226_v49 = vsel %vm561_vm2, %v3100_v15, %v558_v17  ;;  %v2358_v15 = vld [vmem:[%s3683_s2 + $0x1c] sm:$0xf]  ;;  %v560_v21 = vpop.permute.xlu1 %559 }
  0xab   : > { %v3285_v48 = vsel %vm561_vm2, %v3095_v11, %v560_v21  ;;  %v1327_v11 = vrot.slane %v1325_v43, 1  ;;  %v1771_v2 = vsel %vm602_vm1, %v2358_v15, 0  ;;  %v1385_v39 = vshll.u32 %v3226_v49, 16 }
  0xad   : > { %v1264_v23 = vpop.permute.xlu0 %1263 }
  0xae   : > { %v1266_v25 = vpop.permute.xlu1 %1265  ;;  %v1284_v26 = vsel %vm561_vm2, %v3017_v6, %v1264_v23 }
  0xaf   : > { %2573 = vmatmul.mubr.msk.bf16.gmra.mxu1 %vm585_vm3, %v3200_v12  ;;  %v1286_v29 = vsel %vm561_vm2, %v3035_v22, %v1266_v25  ;;  %v1309_v31 = vshll.u32 %v1284_v26, 16  ;;  %v1303_v22 = vshrl.u32 %v3156_v58, 16  ;;  %v1333_v58 = vshrl.u32 %v3186_v5, 16 }
  0xb0   : > { %2555 = vmatmul.mubr.msk.bf16.gmra.mxu0 %vm585_vm3, %v3210_v37  ;;  %2576 = vmatprep.mubr.msk.bf16.mxu1 %vm585_vm3, %v3210_v37  ;;  %v1319_v32 = vshll.u32 %v1286_v29, 16 }
  0xb1   : > { %2558 = vmatprep.mubr.msk.bf16.mxu0 %vm585_vm3, %v3216_v27  ;;  %v1268_v6 = vpop.permute.xlu0 %1267  ;;  %v1311_v36 = vrot.slane %v1309_v31, 1  ;;  %v1308_v44 = vor.u32 %v1307_v34, %v1303_v22  ;;  %v1367_v34 = vrot.slane %v1365_v28, 1 }
  0xb2   : > { %v1270_v38 = vpop.permute.xlu1 %1269  ;;  %v1321_v40 = vrot.slane %v1319_v32, 1  ;;  %v1288_v41 = vsel %vm561_vm2, %v3006_v1, %v1268_v6  ;;  %v1373_v6 = vshrl.u32 %v3216_v27, 16 }
  0xb3   : > { %v1290_v46 = vsel %vm561_vm2, %v3026_v14, %v1270_v38  ;;  %v1329_v50 = vshll.u32 %v1288_v41, 16  ;;  %v1312_v51 = vsel %vm420_vm0, %v1308_v44, %v1311_v36  ;;  %v1323_v14 = vshrl.u32 %v3168_v4, 16 }
  0xb4   : > { %v3295_v1 = vsel %vm420_vm0, %v1318_v47, %v1321_v40  ;;  %v1339_v54 = vshll.u32 %v1290_v46, 16  ;;  %v1387_v46 = vrot.slane %v1385_v39, 1 }
  0xb5   : > { %v1272_v55 = vpop.permute.xlu0 %1271  ;;  %v1331_v57 = vrot.slane %v1329_v50, 1  ;;  %v1328_v63 = vor.u32 %v1327_v11, %v1323_v14 }
  0xb6   : > { %v1274_v56 = vpop.permute.xlu1 %1273  ;;  %v1292_v60 = vsel %vm561_vm2, %v3059_v42, %v1272_v55  ;;  %v1338_v42 = vor.u32 %v1337_v59, %v1333_v58 }
  0xb7   : > { %2577 = vmatmul.mubr.msk.bf16.gmra.mxu1 %vm585_vm3, %v3216_v27  ;;  %v1294_v3 = vsel %vm561_vm2, %v3048_v33, %v1274_v56  ;;  %v1332_v7 = vsel %vm420_vm0, %v1328_v63, %v1331_v57 }
  0xb8   : > { %2559 = vmatmul.mubr.msk.bf16.gmra.mxu0 %vm585_vm3, %v3226_v49  ;;  %2600 = vmatprep.mubr.msk.bf16.mxu1 %vm585_vm3, %v3162_v61  ;;  %v1341_v61 = vrot.slane %v1339_v54, 1  ;;  %v1359_v8 = vshll.u32 %v1294_v3, 16 }
  0xb9   : > { %2582 = vmatprep.mubr.msk.bf16.mxu0 %vm585_vm3, %v3168_v4  ;;  %v1276_v33 = vpop.permute.xlu0 %1275 }
  0xba   : > { %v1342_v10 = vsel %vm420_vm0, %v1338_v42, %v1341_v61  ;;  %v1361_v21 = vrot.slane %v1359_v8, 1  ;;  %v1296_v23 = vsel %vm561_vm2, %v3084_v62, %v1276_v33 }
  0xbb   : > { %v1369_v30 = vshll.u32 %v1296_v23, 16 }
  0xbd   : > { %v1280_v32 = vpop.permute.xlu0 %1279  ;;  %v1371_v22 = vrot.slane %v1369_v30, 1 }
  0xbe   : > { %v1300_v38 = vsel %vm561_vm2, %v3113_v24, %v1280_v32 }
  0xbf   : > { %2601 = vmatmul.mubr.msk.bf16.vlgmr.msra.gmra.mxu1 %vm585_vm3, %v3168_v4  ;;  %v1345_v4 = vshll.u32 %v3194_v9, 16  ;;  %v1389_v43 = vshll.u32 %v1300_v38, 16 }
  0xc0   : > { %2583 = vmatmul.mubr.msk.bf16.vlgmr.msra.gmra.mxu0 %vm585_vm3, %v3186_v5  ;;  %2604 = vmatprep.mubr.msk.bf16.mxu1 %vm585_vm3, %v3186_v5  ;;  %v1349_v5 = vshll.u32 %v1292_v60, 16 }
  0xc1   : > { %2617 = vmatpush3.bf16.msra.mxu0 %v1422_v45  ;;  %2635 = vmatpush3.bf16.msra.mxu1 %v1525_v18  ;;  %v1347_v17 = vrot.slane %v1345_v4, 1  ;;  %v1278_v45 = vpop.permute.xlu1 %1277  ;;  %v1353_v18 = vshrl.u32 %v3200_v12, 16  ;;  %v1391_v24 = vrot.slane %v1389_v43, 1 }
  0xc2   : > { %2586 = vmatprep.mubr.msk.bf16.mxu0 %vm585_vm3, %v3194_v9  ;;  %2694 = vmatprep.subr.msk.bf16.mxu0 %vm602_vm1, %v2358_v15  ;;  %v1357_v15 = vrot.slane %v1355_v0, 1  ;;  %v1298_v25 = vsel %vm561_vm2, %v3073_v52, %v1278_v45  ;;  %v1363_v52 = vshrl.u32 %v3210_v37, 16 }
  0xc3   : > { %2695 = vmatprep.subr.msk.bf16.mxu1 %vm602_vm1, %v2357_v20  ;;  %v1351_v20 = vrot.slane %v1349_v5, 1  ;;  %v1348_v26 = vor.u32 %v1347_v17, %v1343_v16  ;;  %v1379_v31 = vshll.u32 %v1298_v25, 16 }
  0xc4   : > { %v1358_v29 = vor.u32 %v1357_v15, %v1353_v18  ;;  %v1368_v40 = vor.u32 %v1367_v34, %v1363_v52 }
  0xc5   : > { %v1381_v36 = vrot.slane %v1379_v31, 1 }
  0xc6   : > { %v1362_v62 = vsel %vm420_vm0, %v1358_v29, %v1361_v21  ;;  %v1372_v44 = vsel %vm420_vm0, %v1368_v40, %v1371_v22 }
  0xc7   : > { %2605 = vmatmul.mubr.msk.bf16.gmra.mxu1 %vm585_vm3, %v3194_v9  ;;  %v1375_v9 = vshll.u32 %v3216_v27, 16 }
  0xc8   : > { %2587 = vmatmul.mubr.msk.bf16.gmra.mxu0 %vm585_vm3, %v3200_v12  ;;  %2608 = vmatprep.mubr.msk.bf16.mxu1 %vm585_vm3, %v3200_v12  ;;  %v1352_v12 = vsel %vm420_vm0, %v1348_v26, %v1351_v20 }
  0xc9   : > { %2590 = vmatprep.mubr.msk.bf16.mxu0 %vm585_vm3, %v3210_v37  ;;  %v1377_v35 = vrot.slane %v1375_v9, 1 }
  0xcb   : > { %v1378_v41 = vor.u32 %v1377_v35, %v1373_v6 }
  0xcf   : > { %2609 = vmatmul.mubr.msk.bf16.gmra.mxu1 %vm585_vm3, %v3210_v37  ;;  %v1382_v37 = vsel %vm420_vm0, %v1378_v41, %v1381_v36 }
  0xd0   : > { %2591 = vmatmul.mubr.msk.bf16.gmra.mxu0 %vm585_vm3, %v3216_v27  ;;  %2612 = vmatprep.mubr.msk.bf16.mxu1 %vm585_vm3, %v3216_v27  ;;  %v1383_v27 = vshrl.u32 %v3226_v49, 16 }
  0xd1   : > { %2594 = vmatprep.mubr.msk.bf16.mxu0 %vm585_vm3, %v3226_v49 }
  0xd2   : > { %v1388_v47 = vor.u32 %v1387_v46, %v1383_v27 }
  0xd4   : > { %v1392_v50 = vsel %vm420_vm0, %v1388_v47, %v1391_v24 }
  0xd7   : > { %2613 = vmatmul.mubr.msk.bf16.gmra.mxu1 %vm585_vm3, %v3226_v49  ;;  %v1282_v49 = vpop.permute.xlu1 %1281 }
  0xd8   : > { %2595 = vmatmul.mubr.msk.bf16.gmra.mxu0 %vm585_vm3, %v3285_v48  ;;  %2636 = vmatprep.mubr.msk.bf16.mxu1 %vm585_vm3, %v1312_v51  ;;  %v1755_v51 = vshll.u32 %v3285_v48, 16  ;;  %v1302_v53 = vsel %vm561_vm2, %v3098_v13, %v1282_v49 }
  0xd9   : > { %2618 = vmatprep.mubr.msk.bf16.mxu0 %vm585_vm3, %v3295_v1  ;;  %v1759_v11 = vshll.u32 %v1302_v53, 16 }
  0xda   : > { %v1757_v14 = vrot.slane %v1755_v51, 1 }
  0xdb   : > { %v1761_v55 = vrot.slane %v1759_v11, 1 }
  0xdf   : > { %2637 = vmatmul.mubr.msk.bf16.vlgmr.msra.gmra.mxu1 %vm585_vm3, %v3295_v1 }
  0xe0   : > { %2619 = vmatmul.mubr.msk.bf16.vlgmr.msra.gmra.mxu0 %vm585_vm3, %v1332_v7  ;;  %2640 = vmatprep.mubr.msk.bf16.mxu1 %vm585_vm3, %v1332_v7 }
  0xe1   : > { %2653 = vmatpush3.bf16.msra.mxu0 %v1771_v2  ;;  %2671 = vmatpush3.bf16.msra.mxu1 %v1871_v19 }
  0xe2   : > { %2622 = vmatprep.mubr.msk.bf16.mxu0 %vm585_vm3, %v1342_v10 }
  0xe7   : > { %2641 = vmatmul.mubr.msk.bf16.gmra.mxu1 %vm585_vm3, %v1342_v10 }
  0xe8   : > { %2623 = vmatmul.mubr.msk.bf16.gmra.mxu0 %vm585_vm3, %v1352_v12  ;;  %2644 = vmatprep.mubr.msk.bf16.mxu1 %vm585_vm3, %v1352_v12 }
  0xe9   : > { %2626 = vmatprep.mubr.msk.bf16.mxu0 %vm585_vm3, %v1362_v62 }
  0xef   : > { %2645 = vmatmul.mubr.msk.bf16.gmra.mxu1 %vm585_vm3, %v1362_v62 }
  0xf0   : > { %2627 = vmatmul.mubr.msk.bf16.gmra.mxu0 %vm585_vm3, %v1372_v44  ;;  %2648 = vmatprep.mubr.msk.bf16.mxu1 %vm585_vm3, %v1372_v44 }
  0xf1   : > { %2630 = vmatprep.mubr.msk.bf16.mxu0 %vm585_vm3, %v1382_v37 }
  0xf7   : > { %2649 = vmatmul.mubr.msk.bf16.gmra.mxu1 %vm585_vm3, %v1382_v37 }
  0xf8   : > { %2631 = vmatmul.mubr.msk.bf16.gmra.mxu0 %vm585_vm3, %v1392_v50  ;;  %2672 = vmatprep.mubr.msk.bf16.mxu1 %vm585_vm3, %v3295_v1  ;;  %v1753_v1 = vshrl.u32 %v3285_v48, 16  ;;  %v3371_v48 = vld [vmem:[%s3684_s3] ss:$0 sm:$0xff] }
  0xf9   : > { %2654 = vmatprep.mubr.msk.bf16.mxu0 %vm585_vm3, %v1332_v7 }
  0xfa   : > { %v1758_v54 = vor.u32 %v1757_v14, %v1753_v1 }
  0xfc   : > { %v1762_v56 = vsel %vm420_vm0, %v1758_v54, %v1761_v55 }
  0xff   : > { %2673 = vmatmul.mubr.msk.bf16.vlgmr.msra.gmra.mxu1 %vm585_vm3, %v1332_v7 }
 0x100   : > { %2655 = vmatmul.mubr.msk.bf16.vlgmr.msra.gmra.mxu0 %vm585_vm3, %v1342_v10  ;;  %2676 = vmatprep.mubr.msk.bf16.mxu1 %vm585_vm3, %v1342_v10 }
 0x101   : > { %2658 = vmatprep.mubr.msk.bf16.mxu0 %vm585_vm3, %v1352_v12 }
 0x107   : > { %2677 = vmatmul.mubr.msk.bf16.gmra.mxu1 %vm585_vm3, %v1352_v12 }
 0x108   : > { %2659 = vmatmul.mubr.msk.bf16.gmra.mxu0 %vm585_vm3, %v1362_v62  ;;  %2680 = vmatprep.mubr.msk.bf16.mxu1 %vm585_vm3, %v1362_v62 }
 0x109   : > { %2662 = vmatprep.mubr.msk.bf16.mxu0 %vm585_vm3, %v1372_v44 }
 0x10f   : > { %2681 = vmatmul.mubr.msk.bf16.gmra.mxu1 %vm585_vm3, %v1372_v44 }
 0x110   : > { %2663 = vmatmul.mubr.msk.bf16.gmra.mxu0 %vm585_vm3, %v1382_v37  ;;  %2684 = vmatprep.mubr.msk.bf16.mxu1 %vm585_vm3, %v1382_v37 }
 0x111   : > { %2666 = vmatprep.mubr.msk.bf16.mxu0 %vm585_vm3, %v1392_v50 }
 0x117   : > { %2685 = vmatmul.mubr.msk.bf16.gmra.mxu1 %vm585_vm3, %v1392_v50 }
 0x118   : > { %2667 = vmatmul.mubr.msk.bf16.gmra.mxu0 %vm585_vm3, %v1762_v56 }
 0x15f   : > { %v2566_v13 = vpop.f32.mrf.mxu1 }
 0x160   : > { %v2548_v57 = vpop.f32.mrf.mxu0 }
 0x161   : > { %v751_v58 = vadd.f32 %v2566_v13, %v2548_v57  ;;  %v742_v59 = vpop.f32.mrf.mxu1 }
 0x162   : > { %v640_v60 = vpop.f32.mrf.mxu0 }
 0x163   : > { %v813_v61 = vadd.f32 %v3371_v48, %v751_v58  ;;  %v743_v63 = vadd.f32 %v742_v59, %v640_v60  ;;  %v2567_v3 = vpop.f32.mrf.mxu1 }
 0x164   : > { %v2549_v4 = vpop.f32.mrf.mxu0 }
 0x165   : > { %v2407_v2 = vpack.c.bf16 %v813_v61, %v813_v61  ;;  %v811_v19 = vadd.f32 %v3371_v48, %v743_v63  ;;  %v754_v0 = vadd.f32 %v2567_v3, %v2549_v4  ;;  %v745_v7 = vpop.f32.mrf.mxu1 }
 0x166   : > { %v643_v5 = vpop.f32.mrf.mxu0 }
 0x167   : > { %v2405_v42 = vpack.c.bf16 %v811_v19, %v811_v19  ;;  %v814_v8 = vadd.f32 %v3371_v48, %v754_v0  ;;  %v746_v33 = vadd.f32 %v745_v7, %v643_v5  ;;  %v2570_v10 = vpop.f32.mrf.mxu1  ;;  %894 = vst.msk [vmem:[%s3378_s10 + $0x8] sm:$0xf] %vm891_vm4, %v2407_v2 }
 0x168   : > { %v2552_v16 = vpop.f32.mrf.mxu0 }
 0x169   : > { %v2408_v17 = vpack.c.bf16 %v814_v8, %v814_v8  ;;  %v812_v45 = vadd.f32 %v3371_v48, %v746_v33  ;;  %v767_v18 = vadd.f32 %v2570_v10, %v2552_v16  ;;  %v758_v15 = vpop.f32.mrf.mxu1  ;;  %892 = vst.msk [vmem:[%s3378_s10] sm:$0xf] %vm891_vm4, %v2405_v42 }
 0x16a   : > { %v656_v20 = vpop.f32.mrf.mxu0 }
 0x16b   : > { %v2406_v21 = vpack.c.bf16 %v812_v45, %v812_v45  ;;  %v817_v23 = vadd.f32 %v3371_v48, %v767_v18  ;;  %v759_v25 = vadd.f32 %v758_v15, %v656_v20  ;;  %v2571_v26 = vpop.f32.mrf.mxu1  ;;  %895 = vst.msk [vmem:[%s3378_s10 + $0xc] sm:$0xf] %vm891_vm4, %v2408_v17 }
 0x16c   : > { %v2553_v28 = vpop.f32.mrf.mxu0 }
 0x16d   : > { %v2411_v29 = vpack.c.bf16 %v817_v23, %v817_v23  ;;  %v815_v9 = vadd.f32 %v3371_v48, %v759_v25  ;;  %v770_v30 = vadd.f32 %v2571_v26, %v2553_v28  ;;  %v761_v12 = vpop.f32.mrf.mxu1  ;;  %893 = vst.msk [vmem:[%s3378_s10 + $0x4] sm:$0xf] %vm891_vm4, %v2406_v21 }
 0x16e   : > { %v659_v31 = vpop.f32.mrf.mxu0 }
 0x16f   : > { %v2409_v62 = vpack.c.bf16 %v815_v9, %v815_v9  ;;  %v818_v32 = vadd.f32 %v3371_v48, %v770_v30  ;;  %v762_v52 = vadd.f32 %v761_v12, %v659_v31  ;;  %v2574_v34 = vpop.f32.mrf.mxu1  ;;  %898 = vst.msk [vmem:[%s3378_s10 + $0x18] sm:$0xf] %vm891_vm4, %v2411_v29 }
 0x170   : > { %v2556_v6 = vpop.f32.mrf.mxu0 }
 0x171   : > { %v2412_v35 = vpack.c.bf16 %v818_v32, %v818_v32  ;;  %v816_v22 = vadd.f32 %v3371_v48, %v762_v52  ;;  %v783_v36 = vadd.f32 %v2574_v34, %v2556_v6  ;;  %v774_v38 = vpop.f32.mrf.mxu1  ;;  %896 = vst.msk [vmem:[%s3378_s10 + $0x10] sm:$0xf] %vm891_vm4, %v2409_v62 }
 0x172   : > { %v672_v39 = vpop.f32.mrf.mxu0 }
 0x173   : > { %v2410_v40 = vpack.c.bf16 %v816_v22, %v816_v22  ;;  %v821_v41 = vadd.f32 %v3371_v48, %v783_v36  ;;  %v775_v43 = vadd.f32 %v774_v38, %v672_v39  ;;  %v2575_v44 = vpop.f32.mrf.mxu1  ;;  %899 = vst.msk [vmem:[%s3378_s10 + $0x1c] sm:$0xf] %vm891_vm4, %v2412_v35 }
 0x174   : > { %v2557_v37 = vpop.f32.mrf.mxu0 }
 0x175   : > { %v2415_v27 = vpack.c.bf16 %v821_v41, %v821_v41  ;;  %v819_v46 = vadd.f32 %v3371_v48, %v775_v43  ;;  %v786_v24 = vadd.f32 %v2575_v44, %v2557_v37  ;;  %v777_v47 = vpop.f32.mrf.mxu1  ;;  %897 = vst.msk [vmem:[%s3378_s10 + $0x14] sm:$0xf] %vm891_vm4, %v2410_v40 }
 0x176   : > { %v675_v50 = vpop.f32.mrf.mxu0 }
 0x177   : > { %v2413_v49 = vpack.c.bf16 %v819_v46, %v819_v46  ;;  %v822_v51 = vadd.f32 %v3371_v48, %v786_v24  ;;  %v778_v53 = vadd.f32 %v777_v47, %v675_v50  ;;  %v2578_v1 = vpop.f32.mrf.mxu1  ;;  %902 = vst.msk [vmem:[%s3378_s10 + $0x28] sm:$0xf] %vm891_vm4, %v2415_v27 }
 0x178   : > { %v2560_v14 = vpop.f32.mrf.mxu0 }
 0x179   : > { %v2416_v11 = vpack.c.bf16 %v822_v51, %v822_v51  ;;  %v820_v54 = vadd.f32 %v3371_v48, %v778_v53  ;;  %v799_v55 = vadd.f32 %v2578_v1, %v2560_v14  ;;  %v790_v56 = vpop.f32.mrf.mxu1  ;;  %900 = vst.msk [vmem:[%s3378_s10 + $0x20] sm:$0xf] %vm891_vm4, %v2413_v49 }
 0x17a   : > { %v688_v13 = vpop.f32.mrf.mxu0 }
 0x17b   : > { %v2414_v57 = vpack.c.bf16 %v820_v54, %v820_v54  ;;  %v825_v58 = vadd.f32 %v3371_v48, %v799_v55  ;;  %v791_v59 = vadd.f32 %v790_v56, %v688_v13  ;;  %v2579_v60 = vpop.f32.mrf.mxu1  ;;  %903 = vst.msk [vmem:[%s3378_s10 + $0x2c] sm:$0xf] %vm891_vm4, %v2416_v11 }
 0x17c   : > { %v2561_v61 = vpop.f32.mrf.mxu0 }
 0x17d   : > { %v2419_v63 = vpack.c.bf16 %v825_v58, %v825_v58  ;;  %v823_v3 = vadd.f32 %v3371_v48, %v791_v59  ;;  %v802_v4 = vadd.f32 %v2579_v60, %v2561_v61  ;;  %v793_v2 = vpop.f32.mrf.mxu1  ;;  %901 = vst.msk [vmem:[%s3378_s10 + $0x24] sm:$0xf] %vm891_vm4, %v2414_v57 }
 0x17e   : > { %v691_v19 = vpop.f32.mrf.mxu0 }
 0x17f   : > { %v2417_v0 = vpack.c.bf16 %v823_v3, %v823_v3  ;;  %v826_v7 = vadd.f32 %v3371_v48, %v802_v4  ;;  %v794_v5 = vadd.f32 %v793_v2, %v691_v19  ;;  %v2602_v42 = vpop.f32.mrf.mxu1  ;;  %906 = vst.msk [vmem:[%s3378_s10 + $0x38] sm:$0xf] %vm891_vm4, %v2419_v63 }
 0x180   : > { %v2584_v8 = vpop.f32.mrf.mxu0 }
 0x181   : > { %v2420_v33 = vpack.c.bf16 %v826_v7, %v826_v7  ;;  %v824_v10 = vadd.f32 %v3371_v48, %v794_v5  ;;  %v1060_v16 = vadd.f32 %v2602_v42, %v2584_v8  ;;  %v1051_v17 = vpop.f32.mrf.mxu1  ;;  %904 = vst.msk [vmem:[%s3378_s10 + $0x30] sm:$0xf] %vm891_vm4, %v2417_v0 }
 0x182   : > { %v951_v45 = vpop.f32.mrf.mxu0 }
 0x183   : > { %v2418_v18 = vpack.c.bf16 %v824_v10, %v824_v10  ;;  %v1116_v15 = vadd.f32 %v3371_v48, %v1060_v16  ;;  %v1052_v20 = vadd.f32 %v1051_v17, %v951_v45  ;;  %v2603_v21 = vpop.f32.mrf.mxu1  ;;  %907 = vst.msk [vmem:[%s3378_s10 + $0x3c] sm:$0xf] %vm891_vm4, %v2420_v33 }
 0x184   : > { %v2585_v23 = vpop.f32.mrf.mxu0 }
 0x185   : > { %v2423_v25 = vpack.c.bf16 %v1116_v15, %v1116_v15  ;;  %v1114_v26 = vadd.f32 %v3371_v48, %v1052_v20  ;;  %v1063_v28 = vadd.f32 %v2603_v21, %v2585_v23  ;;  %v1054_v29 = vpop.f32.mrf.mxu1  ;;  %905 = vst.msk [vmem:[%s3378_s10 + $0x34] sm:$0xf] %vm891_vm4, %v2418_v18 }
 0x186   : > { %v954_v9 = vpop.f32.mrf.mxu0 }
 0x187   : > { %v1117_v30 = vadd.f32 %v3371_v48, %v1063_v28  ;;  %v1055_v12 = vadd.f32 %v1054_v29, %v954_v9  ;;  %v2606_v31 = vpop.f32.mrf.mxu1  ;;  %1182 = vrot.lane.b32.xlu0 %v2423_v25, %s2889_s12  ;;  %v2421_v32 = vpack.c.bf16 %v1114_v26, %v1114_v26 }
 0x188   : > { %v2588_v62 = vpop.f32.mrf.mxu0 }
 0x189   : > { %v2424_v52 = vpack.c.bf16 %v1117_v30, %v1117_v30  ;;  %v1115_v34 = vadd.f32 %v3371_v48, %v1055_v12  ;;  %v1076_v6 = vadd.f32 %v2606_v31, %v2588_v62  ;;  %v1067_v35 = vpop.f32.mrf.mxu1 }
 0x18a   : > { %v967_v22 = vpop.f32.mrf.mxu0 }
 0x18b   : > { %v1120_v36 = vadd.f32 %v3371_v48, %v1076_v6  ;;  %v1068_v38 = vadd.f32 %v1067_v35, %v967_v22  ;;  %v2607_v39 = vpop.f32.mrf.mxu1  ;;  %1178 = vrot.lane.b32.xlu0 %v2421_v32, %s2889_s12  ;;  %1184 = vrot.lane.b32.xlu1 %v2424_v52, %s2889_s12  ;;  %v2422_v41 = vpack.c.bf16 %v1115_v34, %v1115_v34 }
 0x18c   : > { %v2589_v40 = vpop.f32.mrf.mxu0 }
 0x18d   : > { %v2427_v43 = vpack.c.bf16 %v1120_v36, %v1120_v36  ;;  %v1118_v44 = vadd.f32 %v3371_v48, %v1068_v38  ;;  %v1079_v37 = vadd.f32 %v2607_v39, %v2589_v40  ;;  %v1070_v27 = vpop.f32.mrf.mxu1 }
 0x18e   : > { %v970_v46 = vpop.f32.mrf.mxu0 }
 0x18f   : > { %v1121_v24 = vadd.f32 %v3371_v48, %v1079_v37  ;;  %v1071_v47 = vadd.f32 %v1070_v27, %v970_v46  ;;  %v2610_v50 = vpop.f32.mrf.mxu1  ;;  %1180 = vrot.lane.b32.xlu1 %v2422_v41, %s2889_s12  ;;  %1190 = vrot.lane.b32.xlu0 %v2427_v43, %s2889_s12  ;;  %v2425_v51 = vpack.c.bf16 %v1118_v44, %v1118_v44 }
 0x190   : > { %v2592_v49 = vpop.f32.mrf.mxu0 }
 0x191   : > { %v2428_v53 = vpack.c.bf16 %v1121_v24, %v1121_v24  ;;  %v1119_v1 = vadd.f32 %v3371_v48, %v1071_v47  ;;  %v1092_v14 = vadd.f32 %v2610_v50, %v2592_v49  ;;  %v1083_v11 = vpop.f32.mrf.mxu1 }
 0x192   : > { %v983_v54 = vpop.f32.mrf.mxu0 }
 0x193   : > { %v1124_v55 = vadd.f32 %v3371_v48, %v1092_v14  ;;  %v1084_v56 = vadd.f32 %v1083_v11, %v983_v54  ;;  %v2611_v13 = vpop.f32.mrf.mxu1  ;;  %1186 = vrot.lane.b32.xlu0 %v2425_v51, %s2889_s12  ;;  %1192 = vrot.lane.b32.xlu1 %v2428_v53, %s2889_s12  ;;  %v2426_v58 = vpack.c.bf16 %v1119_v1, %v1119_v1 }
 0x194   : > { %v2593_v57 = vpop.f32.mrf.mxu0 }
 0x195   : > { %v2431_v59 = vpack.c.bf16 %v1124_v55, %v1124_v55  ;;  %v1122_v60 = vadd.f32 %v3371_v48, %v1084_v56  ;;  %v1095_v61 = vadd.f32 %v2611_v13, %v2593_v57  ;;  %v1086_v63 = vpop.f32.mrf.mxu1 }
 0x196   : > { %v986_v3 = vpop.f32.mrf.mxu0 }
 0x197   : > { %v1125_v4 = vadd.f32 %v3371_v48, %v1095_v61  ;;  %v1087_v2 = vadd.f32 %v1086_v63, %v986_v3  ;;  %v2614_v19 = vpop.f32.mrf.mxu1  ;;  %1188 = vrot.lane.b32.xlu1 %v2426_v58, %s2889_s12  ;;  %1198 = vrot.lane.b32.xlu0 %v2431_v59, %s2889_s12  ;;  %v2429_v7 = vpack.c.bf16 %v1122_v60, %v1122_v60 }
 0x198   : > { %v2596_v0 = vpop.f32.mrf.mxu0 }
 0x199   : > { %v2432_v5 = vpack.c.bf16 %v1125_v4, %v1125_v4  ;;  %v1123_v42 = vadd.f32 %v3371_v48, %v1087_v2  ;;  %v1108_v8 = vadd.f32 %v2614_v19, %v2596_v0  ;;  %v1099_v33 = vpop.f32.mrf.mxu1 }
 0x19a   : > { %v999_v10 = vpop.f32.mrf.mxu0 }
 0x19b   : > { %v1128_v16 = vadd.f32 %v3371_v48, %v1108_v8  ;;  %v1100_v17 = vadd.f32 %v1099_v33, %v999_v10  ;;  %v2615_v45 = vpop.f32.mrf.mxu1  ;;  %1194 = vrot.lane.b32.xlu0 %v2429_v7, %s2889_s12  ;;  %1200 = vrot.lane.b32.xlu1 %v2432_v5, %s2889_s12  ;;  %v2430_v15 = vpack.c.bf16 %v1123_v42, %v1123_v42 }
 0x19c   : > { %v2597_v18 = vpop.f32.mrf.mxu0 }
 0x19d   : > { %v2435_v20 = vpack.c.bf16 %v1128_v16, %v1128_v16  ;;  %v1126_v21 = vadd.f32 %v3371_v48, %v1100_v17  ;;  %v1111_v23 = vadd.f32 %v2615_v45, %v2597_v18  ;;  %v1102_v25 = vpop.f32.mrf.mxu1 }
 0x19e   : > { %v1002_v26 = vpop.f32.mrf.mxu0 }
 0x19f   : > { %v1129_v28 = vadd.f32 %v3371_v48, %v1111_v23  ;;  %v1103_v29 = vadd.f32 %v1102_v25, %v1002_v26  ;;  %1196 = vrot.lane.b32.xlu1 %v2430_v15, %s2889_s12  ;;  %1206 = vrot.lane.b32.xlu0 %v2435_v20, %s2889_s12  ;;  %v2638_v9 = vpop.f32.mrf.mxu1  ;;  %v2433_v12 = vpack.c.bf16 %v1126_v21, %v1126_v21 }
 0x1a0   : > { %v2620_v30 = vpop.f32.mrf.mxu0 }
 0x1a1   : > { %v2436_v31 = vpack.c.bf16 %v1129_v28, %v1129_v28  ;;  %v1127_v62 = vadd.f32 %v3371_v48, %v1103_v29  ;;  %v1570_v32 = vadd.f32 %v2638_v9, %v2620_v30  ;;  %v1561_v52 = vpop.f32.mrf.mxu1 }
 0x1a2   : > { %v1458_v34 = vpop.f32.mrf.mxu0 }
 0x1a3   : > { %v1626_v6 = vadd.f32 %v3371_v48, %v1570_v32  ;;  %v1562_v35 = vadd.f32 %v1561_v52, %v1458_v34  ;;  %1202 = vrot.lane.b32.xlu0 %v2433_v12, %s2889_s12  ;;  %1208 = vrot.lane.b32.xlu1 %v2436_v31, %s2889_s12  ;;  %v2639_v22 = vpop.f32.mrf.mxu1  ;;  %v2434_v38 = vpack.c.bf16 %v1127_v62, %v1127_v62 }
 0x1a4   : > { %v2621_v36 = vpop.f32.mrf.mxu0 }
 0x1a5   : > { %v2439_v39 = vpack.c.bf16 %v1626_v6, %v1626_v6  ;;  %v1624_v40 = vadd.f32 %v3371_v48, %v1562_v35  ;;  %v1573_v41 = vadd.f32 %v2639_v22, %v2621_v36  ;;  %v1564_v43 = vpop.f32.mrf.mxu1 }
 0x1a6   : > { %v1461_v44 = vpop.f32.mrf.mxu0 }
 0x1a7   : > { %v1627_v37 = vadd.f32 %v3371_v48, %v1573_v41  ;;  %v1565_v27 = vadd.f32 %v1564_v43, %v1461_v44  ;;  %1204 = vrot.lane.b32.xlu1 %v2434_v38, %s2889_s12  ;;  %v2642_v46 = vpop.f32.mrf.mxu1  ;;  %1692 = vrot.lane.b32.xlu0 %v2439_v39, %s2888_s5  ;;  %v2437_v47 = vpack.c.bf16 %v1624_v40, %v1624_v40  ;;  %s2891_s12 = smov [#allocation2]  }
 0x1a8   : > { %v2624_v24 = vpop.f32.mrf.mxu0 }
 0x1a9   : > { %v2440_v50 = vpack.c.bf16 %v1627_v37, %v1627_v37  ;;  %v1625_v49 = vadd.f32 %v3371_v48, %v1565_v27  ;;  %v1586_v51 = vadd.f32 %v2642_v46, %v2624_v24  ;;  %v1577_v53 = vpop.f32.mrf.mxu1 }
 0x1aa   : > { %v1474_v1 = vpop.f32.mrf.mxu0 }
 0x1ab   : > { %v1630_v14 = vadd.f32 %v3371_v48, %v1586_v51  ;;  %v1578_v11 = vadd.f32 %v1577_v53, %v1474_v1  ;;  %v2643_v54 = vpop.f32.mrf.mxu1  ;;  %1688 = vrot.lane.b32.xlu0 %v2437_v47, %s2888_s5  ;;  %1694 = vrot.lane.b32.xlu1 %v2440_v50, %s2888_s5  ;;  %v2438_v56 = vpack.c.bf16 %v1625_v49, %v1625_v49 }
 0x1ac   : > { %v2625_v55 = vpop.f32.mrf.mxu0 }
 0x1ad   : > { %v2443_v13 = vpack.c.bf16 %v1630_v14, %v1630_v14  ;;  %v1628_v57 = vadd.f32 %v3371_v48, %v1578_v11  ;;  %v1589_v58 = vadd.f32 %v2643_v54, %v2625_v55  ;;  %v1580_v59 = vpop.f32.mrf.mxu1 }
 0x1ae   : > { %v1477_v60 = vpop.f32.mrf.mxu0 }
 0x1af   : > { %v1631_v61 = vadd.f32 %v3371_v48, %v1589_v58  ;;  %v1581_v63 = vadd.f32 %v1580_v59, %v1477_v60  ;;  %1690 = vrot.lane.b32.xlu1 %v2438_v56, %s2888_s5  ;;  %v2646_v3 = vpop.f32.mrf.mxu1  ;;  %1700 = vrot.lane.b32.xlu0 %v2443_v13, %s2888_s5  ;;  %v2441_v2 = vpack.c.bf16 %v1628_v57, %v1628_v57 }
 0x1b0   : > { %v2628_v4 = vpop.f32.mrf.mxu0 }
 0x1b1   : > { %v2444_v19 = vpack.c.bf16 %v1631_v61, %v1631_v61  ;;  %v1629_v0 = vadd.f32 %v3371_v48, %v1581_v63  ;;  %v1602_v7 = vadd.f32 %v2646_v3, %v2628_v4  ;;  %v1593_v5 = vpop.f32.mrf.mxu1 }
 0x1b2   : > { %v1490_v42 = vpop.f32.mrf.mxu0 }
 0x1b3   : > { %v1634_v8 = vadd.f32 %v3371_v48, %v1602_v7  ;;  %v1594_v33 = vadd.f32 %v1593_v5, %v1490_v42  ;;  %v2647_v10 = vpop.f32.mrf.mxu1  ;;  %1696 = vrot.lane.b32.xlu0 %v2441_v2, %s2888_s5  ;;  %1702 = vrot.lane.b32.xlu1 %v2444_v19, %s2888_s5  ;;  %v2442_v17 = vpack.c.bf16 %v1629_v0, %v1629_v0 }
 0x1b4   : > { %v2629_v16 = vpop.f32.mrf.mxu0 }
 0x1b5   : > { %v2447_v45 = vpack.c.bf16 %v1634_v8, %v1634_v8  ;;  %v1632_v18 = vadd.f32 %v3371_v48, %v1594_v33  ;;  %v1605_v15 = vadd.f32 %v2647_v10, %v2629_v16  ;;  %v1596_v20 = vpop.f32.mrf.mxu1 }
 0x1b6   : > { %v1493_v21 = vpop.f32.mrf.mxu0 }
 0x1b7   : > { %v1635_v23 = vadd.f32 %v3371_v48, %v1605_v15  ;;  %v1597_v25 = vadd.f32 %v1596_v20, %v1493_v21  ;;  %1698 = vrot.lane.b32.xlu1 %v2442_v17, %s2888_s5  ;;  %v2650_v26 = vpop.f32.mrf.mxu1  ;;  %1708 = vrot.lane.b32.xlu0 %v2447_v45, %s2888_s5  ;;  %v2445_v29 = vpack.c.bf16 %v1632_v18, %v1632_v18 }
 0x1b8   : > { %v2632_v28 = vpop.f32.mrf.mxu0 }
 0x1b9   : > { %v2448_v9 = vpack.c.bf16 %v1635_v23, %v1635_v23  ;;  %v1633_v30 = vadd.f32 %v3371_v48, %v1597_v25  ;;  %v1618_v12 = vadd.f32 %v2650_v26, %v2632_v28  ;;  %v1609_v31 = vpop.f32.mrf.mxu1 }
 0x1ba   : > { %v1506_v62 = vpop.f32.mrf.mxu0 }
 0x1bb   : > { %v1638_v32 = vadd.f32 %v3371_v48, %v1618_v12  ;;  %v1610_v52 = vadd.f32 %v1609_v31, %v1506_v62  ;;  %v2651_v34 = vpop.f32.mrf.mxu1  ;;  %1704 = vrot.lane.b32.xlu0 %v2445_v29, %s2888_s5  ;;  %1710 = vrot.lane.b32.xlu1 %v2448_v9, %s2888_s5  ;;  %v2446_v35 = vpack.c.bf16 %v1633_v30, %v1633_v30 }
 0x1bc   : > { %v2633_v6 = vpop.f32.mrf.mxu0 }
 0x1bd   : > { %v2451_v22 = vpack.c.bf16 %v1638_v32, %v1638_v32  ;;  %v1636_v36 = vadd.f32 %v3371_v48, %v1610_v52  ;;  %v1621_v38 = vadd.f32 %v2651_v34, %v2633_v6  ;;  %v1612_v39 = vpop.f32.mrf.mxu1 }
 0x1be   : > { %v1509_v40 = vpop.f32.mrf.mxu0 }
 0x1bf   : > { %v1639_v41 = vadd.f32 %v3371_v48, %v1621_v38  ;;  %v1613_v43 = vadd.f32 %v1612_v39, %v1509_v40  ;;  %v2674_v44 = vpop.f32.mrf.mxu1  ;;  %1706 = vrot.lane.b32.xlu1 %v2446_v35, %s2888_s5  ;;  %1716 = vrot.lane.b32.xlu0 %v2451_v22, %s2888_s5  ;;  %v2449_v27 = vpack.c.bf16 %v1636_v36, %v1636_v36 }
 0x1c0   : > { %v2656_v37 = vpop.f32.mrf.mxu0 }
 0x1c1   : > { %v2452_v46 = vpack.c.bf16 %v1639_v41, %v1639_v41  ;;  %v1637_v24 = vadd.f32 %v3371_v48, %v1613_v43  ;;  %v1916_v47 = vadd.f32 %v2674_v44, %v2656_v37  ;;  %v1907_v50 = vpop.f32.mrf.mxu1 }
 0x1c2   : > { %v1807_v49 = vpop.f32.mrf.mxu0 }
 0x1c3   : > { %v1972_v51 = vadd.f32 %v3371_v48, %v1916_v47  ;;  %v1908_v53 = vadd.f32 %v1907_v50, %v1807_v49  ;;  %v2675_v1 = vpop.f32.mrf.mxu1  ;;  %1712 = vrot.lane.b32.xlu0 %v2449_v27, %s2888_s5  ;;  %1718 = vrot.lane.b32.xlu1 %v2452_v46, %s2888_s5  ;;  %v2450_v11 = vpack.c.bf16 %v1637_v24, %v1637_v24 }
 0x1c4   : > { %v2657_v14 = vpop.f32.mrf.mxu0 }
 0x1c5   : > { %v2455_v54 = vpack.c.bf16 %v1972_v51, %v1972_v51  ;;  %v1970_v55 = vadd.f32 %v3371_v48, %v1908_v53  ;;  %v1919_v56 = vadd.f32 %v2675_v1, %v2657_v14  ;;  %v1910_v13 = vpop.f32.mrf.mxu1 }
 0x1c6   : > { %v1810_v57 = vpop.f32.mrf.mxu0 }
 0x1c7   : > { %v1973_v58 = vadd.f32 %v3371_v48, %v1919_v56  ;;  %v1911_v59 = vadd.f32 %v1910_v13, %v1810_v57  ;;  %v2678_v60 = vpop.f32.mrf.mxu1  ;;  %2038 = vrot.lane.b32.xlu0 %v2455_v54, %s2890_s14  ;;  %1714 = vrot.lane.b32.xlu1 %v2450_v11, %s2888_s5  ;;  %v2453_v63 = vpack.c.bf16 %v1970_v55, %v1970_v55 }
 0x1c8   : > { %v2660_v61 = vpop.f32.mrf.mxu0 }
 0x1c9   : > { %v2456_v3 = vpack.c.bf16 %v1973_v58, %v1973_v58  ;;  %v1971_v4 = vadd.f32 %v3371_v48, %v1911_v59  ;;  %v1932_v2 = vadd.f32 %v2678_v60, %v2660_v61  ;;  %v1923_v19 = vpop.f32.mrf.mxu1 }
 0x1ca   : > { %v1823_v0 = vpop.f32.mrf.mxu0 }
 0x1cb   : > { %v1976_v7 = vadd.f32 %v3371_v48, %v1932_v2  ;;  %v1924_v5 = vadd.f32 %v1923_v19, %v1823_v0  ;;  %v2679_v42 = vpop.f32.mrf.mxu1  ;;  %2034 = vrot.lane.b32.xlu0 %v2453_v63, %s2890_s14  ;;  %2040 = vrot.lane.b32.xlu1 %v2456_v3, %s2890_s14  ;;  %v2454_v33 = vpack.c.bf16 %v1971_v4, %v1971_v4 }
 0x1cc   : > { %v2661_v8 = vpop.f32.mrf.mxu0 }
 0x1cd   : > { %v2459_v10 = vpack.c.bf16 %v1976_v7, %v1976_v7  ;;  %v1974_v16 = vadd.f32 %v3371_v48, %v1924_v5  ;;  %v1935_v17 = vadd.f32 %v2679_v42, %v2661_v8  ;;  %v1926_v45 = vpop.f32.mrf.mxu1 }
 0x1ce   : > { %v1826_v18 = vpop.f32.mrf.mxu0 }
 0x1cf   : > { %v1977_v15 = vadd.f32 %v3371_v48, %v1935_v17  ;;  %v1927_v20 = vadd.f32 %v1926_v45, %v1826_v18  ;;  %v2682_v21 = vpop.f32.mrf.mxu1  ;;  %2046 = vrot.lane.b32.xlu0 %v2459_v10, %s2890_s14  ;;  %2036 = vrot.lane.b32.xlu1 %v2454_v33, %s2890_s14  ;;  %v2457_v25 = vpack.c.bf16 %v1974_v16, %v1974_v16 }
 0x1d0   : > { %v2664_v23 = vpop.f32.mrf.mxu0 }
 0x1d1   : > { %v2460_v26 = vpack.c.bf16 %v1977_v15, %v1977_v15  ;;  %v1975_v28 = vadd.f32 %v3371_v48, %v1927_v20  ;;  %v1948_v29 = vadd.f32 %v2682_v21, %v2664_v23  ;;  %v1939_v9 = vpop.f32.mrf.mxu1 }
 0x1d2   : > { %v1839_v30 = vpop.f32.mrf.mxu0 }
 0x1d3   : > { %v1980_v12 = vadd.f32 %v3371_v48, %v1948_v29  ;;  %v1940_v31 = vadd.f32 %v1939_v9, %v1839_v30  ;;  %v2683_v62 = vpop.f32.mrf.mxu1  ;;  %2042 = vrot.lane.b32.xlu0 %v2457_v25, %s2890_s14  ;;  %2048 = vrot.lane.b32.xlu1 %v2460_v26, %s2890_s14  ;;  %v2458_v52 = vpack.c.bf16 %v1975_v28, %v1975_v28 }
 0x1d4   : > { %v2665_v32 = vpop.f32.mrf.mxu0 }
 0x1d5   : > { %v2463_v34 = vpack.c.bf16 %v1980_v12, %v1980_v12  ;;  %v1978_v6 = vadd.f32 %v3371_v48, %v1940_v31  ;;  %v1951_v35 = vadd.f32 %v2683_v62, %v2665_v32  ;;  %v1942_v22 = vpop.f32.mrf.mxu1 }
 0x1d6   : > { %v1842_v36 = vpop.f32.mrf.mxu0 }
 0x1d7   : > { %v1981_v38 = vadd.f32 %v3371_v48, %v1951_v35  ;;  %v1943_v39 = vadd.f32 %v1942_v22, %v1842_v36  ;;  %v2686_v40 = vpop.f32.mrf.mxu1  ;;  %2054 = vrot.lane.b32.xlu0 %v2463_v34, %s2890_s14  ;;  %2044 = vrot.lane.b32.xlu1 %v2458_v52, %s2890_s14  ;;  %v2461_v43 = vpack.c.bf16 %v1978_v6, %v1978_v6 }
 0x1d8   : > { %v2668_v41 = vpop.f32.mrf.mxu0 }
 0x1d9   : > { %v2464_v44 = vpack.c.bf16 %v1981_v38, %v1981_v38  ;;  %v1979_v37 = vadd.f32 %v3371_v48, %v1943_v39  ;;  %v1955_v27 = vpop.f32.mrf.mxu1  ;;  %v1964_v24 = vadd.f32 %v2686_v40, %v2668_v41 }
 0x1da   : > { %v1855_v46 = vpop.f32.mrf.mxu0 }
 0x1db   : > { %v1956_v47 = vadd.f32 %v1955_v27, %v1855_v46  ;;  %v2687_v50 = vpop.f32.mrf.mxu1  ;;  %2050 = vrot.lane.b32.xlu0 %v2461_v43, %s2890_s14  ;;  %2056 = vrot.lane.b32.xlu1 %v2464_v44, %s2890_s14  ;;  %v2462_v51 = vpack.c.bf16 %v1979_v37, %v1979_v37  ;;  %v1984_v11 = vadd.f32 %v3371_v48, %v1964_v24 }
 0x1dc   : > { %v2669_v49 = vpop.f32.mrf.mxu0 }
 0x1dd   : > { %v1982_v53 = vadd.f32 %v3371_v48, %v1956_v47  ;;  %v1958_v1 = vpop.f32.mrf.mxu1  ;;  %v1967_v55 = vadd.f32 %v2687_v50, %v2669_v49  ;;  %v2467_v57 = vpack.c.bf16 %v1984_v11, %v1984_v11 }
 0x1de   : > { %v1858_v14 = vpop.f32.mrf.mxu0 }
 0x1df   : > { %v2465_v54 = vpack.c.bf16 %v1982_v53, %v1982_v53  ;;  %v1959_v56 = vadd.f32 %v1958_v1, %v1858_v14  ;;  %2052 = vrot.lane.b32.xlu1 %v2462_v51, %s2890_s14  ;;  %v1985_v58 = vadd.f32 %v3371_v48, %v1967_v55 }
 0x1e1   : > { %v1983_v13 = vadd.f32 %v3371_v48, %v1959_v56  ;;  %2058 = vrot.lane.b32.xlu0 %v2465_v54, %s2890_s14  ;;  %v2468_v60 = vpack.c.bf16 %v1985_v58, %v1985_v58 }
 0x1e3   : > { %v2466_v59 = vpack.c.bf16 %v1983_v13, %v1983_v13 }
 0x1e5   : > { %2062 = vrot.lane.b32.xlu0 %v2467_v57, %s2890_s14  ;;  %2060 = vrot.lane.b32.xlu1 %v2466_v59, %s2890_s14 }
 0x1e9   : > { %2064 = vrot.lane.b32.xlu1 %v2468_v60, %s2890_s14  ;;  %s2798_s14 = sshll.u32 %s2891_s12, 4  ;;  %s2799_s14 = int_to_ptr.vmem [resolvable:$false] %s2798_s14 }
 0x1ea   : > { %s2800_s13 = scalar_lea.vmem %s2799_s14, 2048  ;;  %p2801_p5 = scmp.lt.s32.totalorder %s3618_s23, %s2799_s14 }
 0x1eb   : > { %p2802_p6 = scmp.lt.s32.totalorder %s2800_s13, %s2794_s8 }
 0x1ed   : > { %p2803_p7 = por %p2802_p6, %p2801_p5 }
 0x1ef   : > { %p2804_p9 = pnand %p2803_p7, %p2797_p4 }
 0x1f9   : > { %v1183_v61 = vpop.permute.xlu0 %1182 }
 0x1fa   : > { %1229 = vst.msk [vmem:[%s3378_s10 + $0x8] sm:$0xf] %vm1226_vm5, %v1183_v61 }
 0x1fd   : > { %v1185_v63 = vpop.permute.xlu1 %1184  ;;  %v1179_v3 = vpop.permute.xlu0 %1178 }
 0x1fe   : > { %1230 = vst.msk [vmem:[%s3378_s10 + $0xc] sm:$0xf] %vm1226_vm5, %v1185_v63  ;;  %1227 = vst.msk [vmem:[%s3378_s10] sm:$0xf] %vm1226_vm5, %v1179_v3 }
 0x201   : > { %v1181_v48 = vpop.permute.xlu1 %1180  ;;  %v1191_v4 = vpop.permute.xlu0 %1190 }
 0x202   : > { %1228 = vst.msk [vmem:[%s3378_s10 + $0x4] sm:$0xf] %vm1226_vm5, %v1181_v48  ;;  %1233 = vst.msk [vmem:[%s3378_s10 + $0x18] sm:$0xf] %vm1226_vm5, %v1191_v4 }
 0x205   : > { %v1193_v2 = vpop.permute.xlu1 %1192  ;;  %v1187_v19 = vpop.permute.xlu0 %1186 }
 0x206   : > { %1234 = vst.msk [vmem:[%s3378_s10 + $0x1c] sm:$0xf] %vm1226_vm5, %v1193_v2  ;;  %1231 = vst.msk [vmem:[%s3378_s10 + $0x10] sm:$0xf] %vm1226_vm5, %v1187_v19 }
 0x209   : > { %v1189_v0 = vpop.permute.xlu1 %1188  ;;  %v1199_v7 = vpop.permute.xlu0 %1198 }
 0x20a   : > { %1232 = vst.msk [vmem:[%s3378_s10 + $0x14] sm:$0xf] %vm1226_vm5, %v1189_v0  ;;  %1237 = vst.msk [vmem:[%s3378_s10 + $0x28] sm:$0xf] %vm1226_vm5, %v1199_v7 }
 0x20d   : > { %v1201_v5 = vpop.permute.xlu1 %1200  ;;  %v1195_v42 = vpop.permute.xlu0 %1194 }
 0x20e   : > { %1238 = vst.msk [vmem:[%s3378_s10 + $0x2c] sm:$0xf] %vm1226_vm5, %v1201_v5  ;;  %1235 = vst.msk [vmem:[%s3378_s10 + $0x20] sm:$0xf] %vm1226_vm5, %v1195_v42 }
 0x211   : > { %v1197_v8 = vpop.permute.xlu1 %1196  ;;  %v1207_v33 = vpop.permute.xlu0 %1206 }
 0x212   : > { %1236 = vst.msk [vmem:[%s3378_s10 + $0x24] sm:$0xf] %vm1226_vm5, %v1197_v8  ;;  %1241 = vst.msk [vmem:[%s3378_s10 + $0x38] sm:$0xf] %vm1226_vm5, %v1207_v33 }
 0x215   : > { %v1209_v10 = vpop.permute.xlu1 %1208  ;;  %v1203_v16 = vpop.permute.xlu0 %1202 }
 0x216   : > { %1242 = vst.msk [vmem:[%s3378_s10 + $0x3c] sm:$0xf] %vm1226_vm5, %v1209_v10  ;;  %1239 = vst.msk [vmem:[%s3378_s10 + $0x30] sm:$0xf] %vm1226_vm5, %v1203_v16 }
 0x219   : > { %v1205_v17 = vpop.permute.xlu1 %1204  ;;  %v1693_v45 = vpop.permute.xlu0 %1692 }
 0x21a   : > { %1240 = vst.msk [vmem:[%s3378_s10 + $0x34] sm:$0xf] %vm1226_vm5, %v1205_v17 }
 0x21b   : > { %1739 = vst.msk [vmem:[%s3378_s10 + $0x8] sm:$0xf] %vm1736_vm6, %v1693_v45 }
 0x21d   : > { %v1695_v18 = vpop.permute.xlu1 %1694  ;;  %v1689_v15 = vpop.permute.xlu0 %1688 }
 0x21e   : > { %1740 = vst.msk [vmem:[%s3378_s10 + $0xc] sm:$0xf] %vm1736_vm6, %v1695_v18  ;;  %1737 = vst.msk [vmem:[%s3378_s10] sm:$0xf] %vm1736_vm6, %v1689_v15 }
 0x221   : > { %v1691_v20 = vpop.permute.xlu1 %1690  ;;  %v1701_v21 = vpop.permute.xlu0 %1700 }
 0x222   : > { %1738 = vst.msk [vmem:[%s3378_s10 + $0x4] sm:$0xf] %vm1736_vm6, %v1691_v20  ;;  %1743 = vst.msk [vmem:[%s3378_s10 + $0x18] sm:$0xf] %vm1736_vm6, %v1701_v21 }
 0x225   : > { %v1703_v23 = vpop.permute.xlu1 %1702  ;;  %v1697_v25 = vpop.permute.xlu0 %1696 }
 0x226   : > { %1744 = vst.msk [vmem:[%s3378_s10 + $0x1c] sm:$0xf] %vm1736_vm6, %v1703_v23  ;;  %1741 = vst.msk [vmem:[%s3378_s10 + $0x10] sm:$0xf] %vm1736_vm6, %v1697_v25 }
 0x229   : > { %v1699_v26 = vpop.permute.xlu1 %1698  ;;  %v1709_v28 = vpop.permute.xlu0 %1708 }
 0x22a   : > { %1742 = vst.msk [vmem:[%s3378_s10 + $0x14] sm:$0xf] %vm1736_vm6, %v1699_v26  ;;  %1747 = vst.msk [vmem:[%s3378_s10 + $0x28] sm:$0xf] %vm1736_vm6, %v1709_v28 }
 0x22d   : > { %v1711_v29 = vpop.permute.xlu1 %1710  ;;  %v1705_v9 = vpop.permute.xlu0 %1704 }
 0x22e   : > { %1748 = vst.msk [vmem:[%s3378_s10 + $0x2c] sm:$0xf] %vm1736_vm6, %v1711_v29  ;;  %1745 = vst.msk [vmem:[%s3378_s10 + $0x20] sm:$0xf] %vm1736_vm6, %v1705_v9 }
 0x231   : > { %v1707_v30 = vpop.permute.xlu1 %1706  ;;  %v1717_v12 = vpop.permute.xlu0 %1716 }
 0x232   : > { %1746 = vst.msk [vmem:[%s3378_s10 + $0x24] sm:$0xf] %vm1736_vm6, %v1707_v30  ;;  %1751 = vst.msk [vmem:[%s3378_s10 + $0x38] sm:$0xf] %vm1736_vm6, %v1717_v12 }
 0x235   : > { %v1719_v31 = vpop.permute.xlu1 %1718  ;;  %v1713_v62 = vpop.permute.xlu0 %1712 }
 0x236   : > { %1752 = vst.msk [vmem:[%s3378_s10 + $0x3c] sm:$0xf] %vm1736_vm6, %v1719_v31  ;;  %1749 = vst.msk [vmem:[%s3378_s10 + $0x30] sm:$0xf] %vm1736_vm6, %v1713_v62 }
 0x239   : > { %v1715_v32 = vpop.permute.xlu1 %1714  ;;  %v2039_v52 = vpop.permute.xlu0 %2038 }
 0x23a   : > { %1750 = vst.msk [vmem:[%s3378_s10 + $0x34] sm:$0xf] %vm1736_vm6, %v1715_v32 }
 0x23b   : > { %2085 = vst.msk [vmem:[%s3378_s10 + $0x8] sm:$0xf] %vm2082_vm7, %v2039_v52 }
 0x23d   : > { %v2041_v34 = vpop.permute.xlu1 %2040  ;;  %v2035_v6 = vpop.permute.xlu0 %2034 }
 0x23e   : > { %2086 = vst.msk [vmem:[%s3378_s10 + $0xc] sm:$0xf] %vm2082_vm7, %v2041_v34  ;;  %2083 = vst.msk [vmem:[%s3378_s10] sm:$0xf] %vm2082_vm7, %v2035_v6 }
 0x241   : > { %v2037_v35 = vpop.permute.xlu1 %2036  ;;  %v2047_v22 = vpop.permute.xlu0 %2046 }
 0x242   : > { %2084 = vst.msk [vmem:[%s3378_s10 + $0x4] sm:$0xf] %vm2082_vm7, %v2037_v35  ;;  %2089 = vst.msk [vmem:[%s3378_s10 + $0x18] sm:$0xf] %vm2082_vm7, %v2047_v22 }
 0x245   : > { %v2049_v36 = vpop.permute.xlu1 %2048  ;;  %v2043_v38 = vpop.permute.xlu0 %2042 }
 0x246   : > { %2090 = vst.msk [vmem:[%s3378_s10 + $0x1c] sm:$0xf] %vm2082_vm7, %v2049_v36  ;;  %2087 = vst.msk [vmem:[%s3378_s10 + $0x10] sm:$0xf] %vm2082_vm7, %v2043_v38 }
 0x249   : > { %v2045_v39 = vpop.permute.xlu1 %2044  ;;  %v2055_v40 = vpop.permute.xlu0 %2054 }
 0x24a   : > { %2088 = vst.msk [vmem:[%s3378_s10 + $0x14] sm:$0xf] %vm2082_vm7, %v2045_v39  ;;  %2093 = vst.msk [vmem:[%s3378_s10 + $0x28] sm:$0xf] %vm2082_vm7, %v2055_v40 }
 0x24d   : > { %v2057_v41 = vpop.permute.xlu1 %2056  ;;  %v2051_v43 = vpop.permute.xlu0 %2050 }
 0x24e   : > { %2094 = vst.msk [vmem:[%s3378_s10 + $0x2c] sm:$0xf] %vm2082_vm7, %v2057_v41  ;;  %2091 = vst.msk [vmem:[%s3378_s10 + $0x20] sm:$0xf] %vm2082_vm7, %v2051_v43 }
 0x251   : > { %v2053_v44 = vpop.permute.xlu1 %2052 }
 0x252   : > { %2092 = vst.msk [vmem:[%s3378_s10 + $0x24] sm:$0xf] %vm2082_vm7, %v2053_v44 }
 0x253   : > { %v2059_v37 = vpop.permute.xlu0 %2058 }
 0x254   : > { %2095 = vst.msk [vmem:[%s3378_s10 + $0x30] sm:$0xf] %vm2082_vm7, %v2059_v37 }
 0x257   : > { %v2061_v27 = vpop.permute.xlu1 %2060  ;;  %v2063_v46 = vpop.permute.xlu0 %2062 }
 0x258   : > { %2096 = vst.msk [vmem:[%s3378_s10 + $0x34] sm:$0xf] %vm2082_vm7, %v2061_v27  ;;  %2097 = vst.msk [vmem:[%s3378_s10 + $0x38] sm:$0xf] %vm2082_vm7, %v2063_v46 }
 0x25b   : > { %v2065_v24 = vpop.permute.xlu1 %2064 }
 0x25c   : > { %2098 = vst.msk [vmem:[%s3378_s10 + $0x3c] sm:$0xf] %vm2082_vm7, %v2065_v24 }
 0x25d   : > { %2807 = shalt.err (!%p2804_p9)
}
 0x25e   : > { %s2808_s27 = scalar_lea.hbm %s3623_s19, 1024  ;;  %s2812_s11 = scalar_lea.hbm %s3685_s4, 4096 }
 0x25f   : > { %p2809_p10 = scmp.ne.s32.totalorder %s3623_s19, %s2808_s27  ;;  %p2813_p13 = scmp.lt.s32.totalorder %s3623_s19, %s3685_s4 }
 0x260   : > { %p2814_p0 = scmp.lt.s32.totalorder %s2812_s11, %s2808_s27 }
 0x261   : > { %p2810_p11 = pnand %p2809_p10, %p2969_p3 }
 0x262   : > { %p2815_p1 = por %p2814_p0, %p2813_p13 }
 0x263   : > { %p2811_p12 = pneg %p2810_p11 }
 0x265   : > { %p2816_p2 = pnand %p2815_p1, %p2811_p12 }
 0x267   : > { %2819 = shalt.err (!%p2816_p2)
}
 0x268   : > { %s2892_s30 = smov 64  }
 0x269   : > { %2699 = dma.vmem_to_hbm [thread:$0]  (%p2969_p3), %s3618_s23, 1024, %s3623_s19, %s3629_s6, %s2892_s30, %s2892_s30, %s2888_s5  }
 0x26a PF: > { %p2705_p4 = scmp.ge.s32.totalorder %s2886_s22, 2  ;;  %s2131_s8 = sand.u32 1, %s2858_s15  }
 0x26b   : > { %s2132_s12 = scalar_lea.sflag [#allocation3], %s2131_s8 }
 0x26c   : > { %p2702_p5 = pnand %p2705_p4, %p2978_p8 }
 0x26e   : > { %p2703_p6 = pneg %p2702_p5 }
 0x270   : > { %2853 = dma.done.wait (%p2703_p6), %s2132_s12, 1024  }
 0x271   : > { %2855 = vsyncadd (%p2703_p6), %s2132_s12, 4294966272  ;;  %s17_s22 = sadd.s32 1, %s2886_s22   ;;  %s3688_s15 = smov %s2862_s16 }
 0x272   : > { %p14_p7 = scmp.ge.s32.totalorder %s17_s22, 6   ;;  %s3689_s16 = smov %s2866_s17 }
 0x273   : > { %s3690_s17 = smov %s2987_s7  ;;  %s3691_s18 = smov %s2878_s20 }
 0x274   : > { %s3692_s19 = smov %s2882_s21  ;;  %s3693_s20 = smov %s3696_s25 }
 0x275   : > { %s3694_s21 = smov %s3700_s26  ;;  %16 = sbr.rel (!%p14_p7) target bundleno = 5 (0x5), region = 81 }
 0x27a   :  { %2137 = vsyncpa [#allocation3], 1 }
 0x27b   :  { %2139 = vsyncpa [#allocation3 + $0x1], 1 }

</bundles_post_ra>
